<compile_context>
chip_gen: v7x
topology: tpu7x:2x2x1
jax: 0.10.0
libtpu: 0.0.40
codegen_flags: <defaults>
</compile_context>

<pallas_src>
import jax
import jax.numpy as jnp
import numpy as np
from jax import lax
from jax.experimental import pallas as pl
from jax.experimental.pallas import tpu as pltpu


# --------------------------------------------------------------------------
# samePaddingForConv3d (stride=(1,1,1) in the module; reduces to (k-1)//2)
# --------------------------------------------------------------------------
def same_padding_for_conv3d(spatial, kernel_size, stride=(1, 1, 1)):
    d_in, h_in, w_in = spatial
    d_pad = ((d_in - 1) * stride[0] - d_in + (kernel_size[0] - 1) + 1) // 2
    h_pad = ((h_in - 1) * stride[1] - h_in + (kernel_size[1] - 1) + 1) // 2
    w_pad = ((w_in - 1) * stride[2] - w_in + (kernel_size[2] - 1) + 1) // 2
    return (d_pad, h_pad, w_pad)


def _round_up(a, b):
    return ((a + b - 1) // b) * b


# --------------------------------------------------------------------------
# Pallas kernel: one lane-dense matmul per P-tile.
#   w_ref: (Cout, K)      bf16  (resident across the grid)
#   p_ref: (K, TILE_P)    bf16
#   b_ref: (Cout, 1)      f32   (resident)
#   o_ref: (Cout, TILE_P) f32
# --------------------------------------------------------------------------
def _conv_mm_kernel(p_ref, w_ref, b_ref, o_ref):
    acc = jnp.dot(w_ref[...], p_ref[...], preferred_element_type=jnp.float32)
    o_ref[...] = (acc + b_ref[...]).astype(o_ref.dtype)


def _build_patches(x_cf, kernel_size, padding, pad_mode, compute_dtype):
    """x_cf: (Cin, N, D, H, W) -> patches (K, P) with K=(kd,kh,kw,cin)-ordered,
    P=(n,do,ho,wo)-ordered. Built in compute_dtype (bf16) to halve HBM traffic."""
    KD, KH, KW = kernel_size
    pd, ph, pw = padding
    x_cf = x_cf.astype(compute_dtype)
    if pd or ph or pw:
        x_cf = jnp.pad(x_cf, ((0, 0), (0, 0), (pd, pd), (ph, ph), (pw, pw)),
                       mode=pad_mode)
    C, N, Dp, Hp, Wp = x_cf.shape
    Do, Ho, Wo = Dp - KD + 1, Hp - KH + 1, Wp - KW + 1
    taps = []
    for kd in range(KD):
        for kh in range(KH):
            for kw in range(KW):
                taps.append(x_cf[:, :, kd:kd + Do, kh:kh + Ho, kw:kw + Wo])
    patches = jnp.stack(taps, axis=0)                       # (T, C, N, Do, Ho, Wo)
    patches = patches.reshape(KD * KH * KW * C, N * Do * Ho * Wo)
    return patches, (N, Do, Ho, Wo)


def conv3d_pallas(x_cf, w, b, padding, pad_mode, *, tile_p=1024,
                  compute_dtype=jnp.bfloat16):
    """Channels-first conv3d (stride 1).

    x_cf: (Cin, N, D, H, W) f32
    w   : (Cout, Cin, KD, KH, KW) f32   (PyTorch Conv3d layout)
    b   : (Cout,) f32
    returns (Cout, N, Do, Ho, Wo) f32
    """
    assert tile_p % 128 == 0
    Cout, Cin, KD, KH, KW = w.shape
    patches, (N, Do, Ho, Wo) = _build_patches(
        x_cf, (KD, KH, KW), padding, pad_mode, compute_dtype)
    K, P = patches.shape

    # Weights: (Cout, Cin, KD, KH, KW) -> (Cout, KD, KH, KW, Cin) -> (Cout, K)
    # K ordering (kd, kh, kw, cin) matches the patch build above.
    w2 = jnp.transpose(w, (0, 2, 3, 4, 1)).reshape(Cout, K).astype(compute_dtype)
    b2 = b.reshape(Cout, 1).astype(jnp.float32)

    # Tile the P axis; pad P up to a multiple of the tile (padded cols sliced off).
    tile = min(tile_p, _round_up(P, 128))
    p_pad = _round_up(P, tile)
    if p_pad != P:
        patches = jnp.pad(patches, ((0, 0), (0, p_pad - P)))
    grid = (p_pad // tile,)

    out = pl.pallas_call(
        _conv_mm_kernel,
        out_shape=jax.ShapeDtypeStruct((Cout, p_pad), jnp.float32),
        grid_spec=pltpu.PrefetchScalarGridSpec(
            num_scalar_prefetch=0,
            grid=grid,
            in_specs=[
                pl.BlockSpec((K, tile), lambda i: (0, i)),      # patch tile
                pl.BlockSpec((Cout, K), lambda i: (0, 0)),      # weights resident
                pl.BlockSpec((Cout, 1), lambda i: (0, 0)),      # bias resident
            ],
            out_specs=pl.BlockSpec((Cout, tile), lambda i: (0, i)),
        ),
        compiler_params=pltpu.CompilerParams(
            dimension_semantics=("parallel",)),
    )(patches, w2, b2)

    out = out[:, :P]
    return out.reshape(Cout, N, Do, Ho, Wo)


# --------------------------------------------------------------------------
# Parameters (deterministic, PyTorch Conv3d-style init; weight_norm g = ||v||)
# --------------------------------------------------------------------------
def make_weight_norm_conv_params(key, in_ch, out_ch, kernel_size):
    kv, kb = jax.random.split(key)
    KD, KH, KW = kernel_size
    fan_in = in_ch * KD * KH * KW
    bound = 1.0 / np.sqrt(fan_in)
    v = jax.random.uniform(kv, (out_ch, in_ch, KD, KH, KW),
                           minval=-bound, maxval=bound, dtype=jnp.float32)
    b = jax.random.uniform(kb, (out_ch,),
                           minval=-bound, maxval=bound, dtype=jnp.float32)
    g = jnp.sqrt(jnp.sum(v * v, axis=(1, 2, 3, 4)))   # weight_norm init
    return dict(v=v, g=g, b=b)


def weight_norm_effective(v, g):
    # PyTorch weight_norm (dim=0): w = g * v / ||v||, norm over (Cin,KD,KH,KW)
    norm = jnp.sqrt(jnp.sum(v * v, axis=(1, 2, 3, 4), keepdims=True))
    return v * (g.reshape(-1, 1, 1, 1, 1) / norm)      # (Cout, Cin, KD, KH, KW)


def init_upsample_conv3d(key, in_channels, num_filters, kernel_size,
                         up_sample_scale, initial_depth):
    n_norm = initial_depth // up_sample_scale          # NormConv3D applications
    keys = jax.random.split(key, n_norm + 1)
    norm_convs = []
    c = in_channels
    for i in range(n_norm):
        norm_convs.append(
            make_weight_norm_conv_params(keys[i], c, num_filters, kernel_size))
        c = num_filters
    upsample = make_weight_norm_conv_params(
        keys[-1], num_filters, up_sample_scale ** 2, kernel_size)
    return dict(norm_convs=norm_convs, upsample=upsample)


# --------------------------------------------------------------------------
# Forward passes (Pallas and XLA reference)
# --------------------------------------------------------------------------
def upsample_conv3d_forward(x_ncdhw, params, kernel_size, *, tile_p=1024,
                            compute_dtype=jnp.bfloat16):
    # Internal layout is channels-first (C, N, D, H, W): the kernel's
    # lane-dense (Cout, P) output feeds the next layer with no relayout.
    x = jnp.transpose(x_ncdhw, (1, 0, 2, 3, 4))
    for p in params["norm_convs"]:                      # NormConv3D stack (reflect)
        w = weight_norm_effective(p["v"], p["g"])
        pad = same_padding_for_conv3d(x.shape[2:5], kernel_size)
        x = conv3d_pallas(x, w, p["b"], pad, "reflect",
                          tile_p=tile_p, compute_dtype=compute_dtype)
    p = params["upsample"]                              # upSampleBlock (padding=0)
    w = weight_norm_effective(p["v"], p["g"])
    x = conv3d_pallas(x, w, p["b"], (0, 0, 0), "constant",
                      tile_p=tile_p, compute_dtype=compute_dtype)
    return jnp.transpose(x, (1, 0, 2, 3, 4))            # -> NCDHW


def _conv3d_ref(x, w, b, padding, pad_mode, compute_dtype):
    pd, ph, pw = padding
    if pd or ph or pw:
        x = jnp.pad(x, ((0, 0), (0, 0), (pd, pd), (ph, ph), (pw, pw)),
                    mode=pad_mode)
    out = lax.conv_general_dilated(
        x.astype(compute_dtype), w.astype(compute_dtype),
        window_strides=(1, 1, 1), padding="VALID",
        dimension_numbers=("NCDHW", "OIDHW", "NCDHW"),
        preferred_element_type=jnp.float32)
    return out + b.reshape(1, -1, 1, 1, 1)


def upsample_conv3d_ref(x_ncdhw, params, kernel_size,
                        compute_dtype=jnp.bfloat16):
    x = x_ncdhw
    for p in params["norm_convs"]:
        w = weight_norm_effective(p["v"], p["g"])
        pad = same_padding_for_conv3d(x.shape[2:5], kernel_size)
        x = _conv3d_ref(x, w, p["b"], pad, "reflect", compute_dtype)
    p = params["upsample"]
    w = weight_norm_effective(p["v"], p["g"])
    x = _conv3d_ref(x, w, p["b"], (0, 0, 0), "constant", compute_dtype)
    return x


# --------------------------------------------------------------------------
if __name__ == "__main__":
    key = jax.random.PRNGKey(0)
    kx, kp = jax.random.split(key)

    # Small shapes consistent with the module (NCDHW input).
    N, C, D, H, W = 2, 4, 8, 16, 16
    num_filters = 8
    kernel_size = (3, 3, 3)
    up_sample_scale = 2
    initial_depth = 8          # -> 4 NormConv3D layers + 1 upSampleBlock conv

    x = jax.random.normal(kx, (N, C, D, H, W), dtype=jnp.float32)
    params = init_upsample_conv3d(kp, C, num_filters, kernel_size,
                                  up_sample_scale, initial_depth)

    fwd = jax.jit(lambda xx, pp: upsample_conv3d_forward(xx, pp, kernel_size))
    out = jax.block_until_ready(fwd(x, params))

    # valid conv at the end: spatial shrinks by (k-1); channels = upSampleScale**2
    assert out.shape == (N, up_sample_scale ** 2, D - 2, H - 2, W - 2), out.shape

    # Reference uses the same bf16-input / f32-accumulate precision recipe, so
    # the comparison isolates kernel correctness (tap/weight ordering, padding,
    # weight-norm, bias) from the intended mixed-precision choice.
    ref = jax.block_until_ready(upsample_conv3d_ref(x, params, kernel_size))
    np.testing.assert_allclose(np.asarray(out), np.asarray(ref),
                               atol=3e-3, rtol=3e-2)

    print("KERNEL_OK")
</pallas_src>

<mosaic_0001>
module attributes {stable_mosaic.version = 11 : i64} {
  func.func @_conv_mm_kernel(%arg0: i32, %arg1: memref<108x1024xbf16, #tpu.memory_space<vmem>>, %arg2: memref<8x108xbf16, #tpu.memory_space<vmem>>, %arg3: memref<8x1xf32, #tpu.memory_space<vmem>>, %arg4: memref<8x1024xf32, #tpu.memory_space<vmem>>) attributes {dimension_semantics = [#tpu.dimension_semantics<parallel>], iteration_bounds = array<i64: 4>, scalar_prefetch = 0 : i64, scratch_operands = 0 : i64, tpu.core_type = #tpu.core_type<tc>, window_params = [{transform_indices = @transform_0, window_bounds = array<i64: 108, 1024>}, {pipeline_mode = #tpu.pipeline_mode<synchronous>, transform_indices = @transform_1, window_bounds = array<i64: 8, 108>}, {pipeline_mode = #tpu.pipeline_mode<synchronous>, transform_indices = @transform_2, window_bounds = array<i64: 8, 1>}, {transform_indices = @transform_3, window_bounds = array<i64: 8, 1024>}]} {
    %c0 = arith.constant 0 : index
    %c0_0 = arith.constant 0 : index
    %0 = vector.load %arg2[%c0, %c0_0] : memref<8x108xbf16, #tpu.memory_space<vmem>>, vector<8x108xbf16>
    %c0_1 = arith.constant 0 : index
    %c0_2 = arith.constant 0 : index
    %1 = vector.load %arg1[%c0_1, %c0_2] : memref<108x1024xbf16, #tpu.memory_space<vmem>>, vector<108x1024xbf16>
    %cst = arith.constant dense<0.000000e+00> : vector<8x1024xf32>
    %2 = tpu.matmul %0, %1, %cst {dimension_numbers = #tpu.dot_dimension_numbers<[1], [0], [0], [1], [0, 0, 1, 1], [], []>} : vector<8x108xbf16>, vector<108x1024xbf16>, vector<8x1024xf32> -> vector<8x1024xf32>
    %c0_3 = arith.constant 0 : index
    %c0_4 = arith.constant 0 : index
    %3 = vector.load %arg3[%c0_3, %c0_4] : memref<8x1xf32, #tpu.memory_space<vmem>>, vector<8x1xf32>
    %4 = vector.broadcast %3 : vector<8x1xf32> to vector<8x1024xf32>
    %5 = arith.addf %2, %4 : vector<8x1024xf32>
    %c0_5 = arith.constant 0 : index
    %c0_6 = arith.constant 0 : index
    %6 = vector.load %arg4[%c0_5, %c0_6] : memref<8x1024xf32, #tpu.memory_space<vmem>>, vector<8x1024xf32>
    tpu.vector_store %arg4[%c0_5, %c0_6], %5 {strides = array<i32>} : memref<8x1024xf32, #tpu.memory_space<vmem>>, vector<8x1024xf32>,
    return
  }
  func.func @transform_0(%arg0: i32) -> (i32, i32) {
    %c0_i32 = arith.constant 0 : i32
    %c0_i32_0 = arith.constant 0 : i32
    return %c0_i32, %arg0 : i32, i32
  }
  func.func @transform_1(%arg0: i32) -> (i32, i32) {
    %c0_i32 = arith.constant 0 : i32
    %c0_i32_0 = arith.constant 0 : i32
    %c0_i32_1 = arith.constant 0 : i32
    return %c0_i32, %c0_i32_0 : i32, i32
  }
  func.func @transform_2(%arg0: i32) -> (i32, i32) {
    %c0_i32 = arith.constant 0 : i32
    %c0_i32_0 = arith.constant 0 : i32
    %c0_i32_1 = arith.constant 0 : i32
    return %c0_i32, %c0_i32_0 : i32, i32
  }
  func.func @transform_3(%arg0: i32) -> (i32, i32) {
    %c0_i32 = arith.constant 0 : i32
    %c0_i32_0 = arith.constant 0 : i32
    return %c0_i32, %arg0 : i32, i32
  }
}

module attributes {stable_mosaic.version = 11 : i64} {
  func.func @_conv_mm_kernel(%arg0: i32, %arg1: memref<216x1024xbf16, #tpu.memory_space<vmem>>, %arg2: memref<8x216xbf16, #tpu.memory_space<vmem>>, %arg3: memref<8x1xf32, #tpu.memory_space<vmem>>, %arg4: memref<8x1024xf32, #tpu.memory_space<vmem>>) attributes {dimension_semantics = [#tpu.dimension_semantics<parallel>], iteration_bounds = array<i64: 4>, scalar_prefetch = 0 : i64, scratch_operands = 0 : i64, tpu.core_type = #tpu.core_type<tc>, window_params = [{transform_indices = @transform_0, window_bounds = array<i64: 216, 1024>}, {pipeline_mode = #tpu.pipeline_mode<synchronous>, transform_indices = @transform_1, window_bounds = array<i64: 8, 216>}, {pipeline_mode = #tpu.pipeline_mode<synchronous>, transform_indices = @transform_2, window_bounds = array<i64: 8, 1>}, {transform_indices = @transform_3, window_bounds = array<i64: 8, 1024>}]} {
    %c0 = arith.constant 0 : index
    %c0_0 = arith.constant 0 : index
    %0 = vector.load %arg2[%c0, %c0_0] : memref<8x216xbf16, #tpu.memory_space<vmem>>, vector<8x216xbf16>
    %c0_1 = arith.constant 0 : index
    %c0_2 = arith.constant 0 : index
    %1 = vector.load %arg1[%c0_1, %c0_2] : memref<216x1024xbf16, #tpu.memory_space<vmem>>, vector<216x1024xbf16>
    %cst = arith.constant dense<0.000000e+00> : vector<8x1024xf32>
    %2 = tpu.matmul %0, %1, %cst {dimension_numbers = #tpu.dot_dimension_numbers<[1], [0], [0], [1], [0, 0, 1, 1], [], []>} : vector<8x216xbf16>, vector<216x1024xbf16>, vector<8x1024xf32> -> vector<8x1024xf32>
    %c0_3 = arith.constant 0 : index
    %c0_4 = arith.constant 0 : index
    %3 = vector.load %arg3[%c0_3, %c0_4] : memref<8x1xf32, #tpu.memory_space<vmem>>, vector<8x1xf32>
    %4 = vector.broadcast %3 : vector<8x1xf32> to vector<8x1024xf32>
    %5 = arith.addf %2, %4 : vector<8x1024xf32>
    %c0_5 = arith.constant 0 : index
    %c0_6 = arith.constant 0 : index
    %6 = vector.load %arg4[%c0_5, %c0_6] : memref<8x1024xf32, #tpu.memory_space<vmem>>, vector<8x1024xf32>
    tpu.vector_store %arg4[%c0_5, %c0_6], %5 {strides = array<i32>} : memref<8x1024xf32, #tpu.memory_space<vmem>>, vector<8x1024xf32>,
    return
  }
  func.func @transform_0(%arg0: i32) -> (i32, i32) {
    %c0_i32 = arith.constant 0 : i32
    %c0_i32_0 = arith.constant 0 : i32
    return %c0_i32, %arg0 : i32, i32
  }
  func.func @transform_1(%arg0: i32) -> (i32, i32) {
    %c0_i32 = arith.constant 0 : i32
    %c0_i32_0 = arith.constant 0 : i32
    %c0_i32_1 = arith.constant 0 : i32
    return %c0_i32, %c0_i32_0 : i32, i32
  }
  func.func @transform_2(%arg0: i32) -> (i32, i32) {
    %c0_i32 = arith.constant 0 : i32
    %c0_i32_0 = arith.constant 0 : i32
    %c0_i32_1 = arith.constant 0 : i32
    return %c0_i32, %c0_i32_0 : i32, i32
  }
  func.func @transform_3(%arg0: i32) -> (i32, i32) {
    %c0_i32 = arith.constant 0 : i32
    %c0_i32_0 = arith.constant 0 : i32
    return %c0_i32, %arg0 : i32, i32
  }
}

module attributes {stable_mosaic.version = 11 : i64} {
  func.func @_conv_mm_kernel(%arg0: i32, %arg1: memref<216x1024xbf16, #tpu.memory_space<vmem>>, %arg2: memref<4x216xbf16, #tpu.memory_space<vmem>>, %arg3: memref<4x1xf32, #tpu.memory_space<vmem>>, %arg4: memref<4x1024xf32, #tpu.memory_space<vmem>>) attributes {dimension_semantics = [#tpu.dimension_semantics<parallel>], iteration_bounds = array<i64: 3>, scalar_prefetch = 0 : i64, scratch_operands = 0 : i64, tpu.core_type = #tpu.core_type<tc>, window_params = [{transform_indices = @transform_0, window_bounds = array<i64: 216, 1024>}, {pipeline_mode = #tpu.pipeline_mode<synchronous>, transform_indices = @transform_1, window_bounds = array<i64: 4, 216>}, {pipeline_mode = #tpu.pipeline_mode<synchronous>, transform_indices = @transform_2, window_bounds = array<i64: 4, 1>}, {transform_indices = @transform_3, window_bounds = array<i64: 4, 1024>}]} {
    %c0 = arith.constant 0 : index
    %c0_0 = arith.constant 0 : index
    %0 = vector.load %arg2[%c0, %c0_0] : memref<4x216xbf16, #tpu.memory_space<vmem>>, vector<4x216xbf16>
    %c0_1 = arith.constant 0 : index
    %c0_2 = arith.constant 0 : index
    %1 = vector.load %arg1[%c0_1, %c0_2] : memref<216x1024xbf16, #tpu.memory_space<vmem>>, vector<216x1024xbf16>
    %cst = arith.constant dense<0.000000e+00> : vector<4x1024xf32>
    %2 = tpu.matmul %0, %1, %cst {dimension_numbers = #tpu.dot_dimension_numbers<[1], [0], [0], [1], [0, 0, 1, 1], [], []>} : vector<4x216xbf16>, vector<216x1024xbf16>, vector<4x1024xf32> -> vector<4x1024xf32>
    %c0_3 = arith.constant 0 : index
    %c0_4 = arith.constant 0 : index
    %3 = vector.load %arg3[%c0_3, %c0_4] : memref<4x1xf32, #tpu.memory_space<vmem>>, vector<4x1xf32>
    %4 = vector.broadcast %3 : vector<4x1xf32> to vector<4x1024xf32>
    %5 = arith.addf %2, %4 : vector<4x1024xf32>
    %c0_5 = arith.constant 0 : index
    %c0_6 = arith.constant 0 : index
    %6 = vector.load %arg4[%c0_5, %c0_6] : memref<4x1024xf32, #tpu.memory_space<vmem>>, vector<4x1024xf32>
    tpu.vector_store %arg4[%c0_5, %c0_6], %5 {strides = array<i32>} : memref<4x1024xf32, #tpu.memory_space<vmem>>, vector<4x1024xf32>,
    return
  }
  func.func @transform_0(%arg0: i32) -> (i32, i32) {
    %c0_i32 = arith.constant 0 : i32
    %c0_i32_0 = arith.constant 0 : i32
    return %c0_i32, %arg0 : i32, i32
  }
  func.func @transform_1(%arg0: i32) -> (i32, i32) {
    %c0_i32 = arith.constant 0 : i32
    %c0_i32_0 = arith.constant 0 : i32
    %c0_i32_1 = arith.constant 0 : i32
    return %c0_i32, %c0_i32_0 : i32, i32
  }
  func.func @transform_2(%arg0: i32) -> (i32, i32) {
    %c0_i32 = arith.constant 0 : i32
    %c0_i32_0 = arith.constant 0 : i32
    %c0_i32_1 = arith.constant 0 : i32
    return %c0_i32, %c0_i32_0 : i32, i32
  }
  func.func @transform_3(%arg0: i32) -> (i32, i32) {
    %c0_i32 = arith.constant 0 : i32
    %c0_i32_0 = arith.constant 0 : i32
    return %c0_i32, %arg0 : i32, i32
  }
}

</mosaic_0001>

<bundles_post_ra>
// kernel: _lambda_.5
= control target key start
LH: loop header
LB: loop body
LE: loop exit
PB: predicated region body
PF: predicated region fallthrough
CT: control target
= control target key end

     0   :  { %s1051_s12 = smov 0   ;;  %s1053_s13 = smov 0   ;;  %s1316_s0 = inlined_call_operand.vmem [shape: bf16[108,4096], index: 0, kind: input, shape index: {}]   ;;  %s1317_s1 = inlined_call_operand.vmem [shape: bf16[8,108], index: 1, kind: input, shape index: {}]   ;;  %s1318_s2 = inlined_call_operand.vmem [shape: f32[8,1], index: 2, kind: input, shape index: {}]   ;;  %s1319_s3 = inlined_call_operand.vmem [shape: f32[8,4096], index: 3, kind: output, shape index: {}]  }
   0x1   :  { %s1055_s14 = smov 0  }
   0x2 LB: > { %s902_s15 = sadd.s32 4294967295, %s1028_s14   ;;  %s1068_s16 = sadd.s32 1, %s1028_s14   ;;  %s1028_s14 = sphi %s1055_s14, %s1322_s14   ;;  %s1024_s13 = sphi %s1053_s13, %s1321_s13   ;;  %s1020_s12 = sphi %s1051_s12, %s1320_s12  }
   0x3   : > { %s17_s17 = ssub.s32 %s1028_s14, %s1068_s16  ;;  %s20_s18 = sadd.s32 1, %s1024_s13 }
   0x4   : > { %p18_p0 = scmp.eq.s32.totalorder %s17_s17, 0  ;;  %p27_p1 = scmp.ne.s32.totalorder %s1024_s13, %s1020_s12 }
   0x5   : > { %p28_p2 = scmp.eq.s32.totalorder %s1028_s14, 0  ;;  %p905_p4 = scmp.ge.s32.totalorder %s1028_s14, 4 }
   0x6   : > { %s1077_s19 = scalar_select %p18_p0, %s1024_s13, %s20_s18  }
   0x7   : > { %p29_p3 = por %p28_p2, %p27_p1  ;;  %127 = sbr.rel (%p905_p4) target bundleno = 47 (0x2f), region = 24 }
   0xe   : > { %130 = sbr.rel (!%p29_p3) target bundleno = 47 (0x2f), region = 28  ;;  %s132_s20 = sand.u32 (%p29_p3), 1, %s1024_s13  }
   0xf   : > { %s977_s21 = sshll.u32 (%p29_p3), %s1028_s14, 5  ;;  %s978_s22 = smul.u32 (%p29_p3), 448, %s132_s20 }
  0x10   : > { %s1085_s25 = scalar_lea.vmem (%p29_p3), %s1316_s0, %s977_s21 }
  0x11   : > { %v150_v0 = vld [vmem:[%s1085_s25] sm:$0xff] (%p29_p3)  ;;  %v152_v1 = vld [vmem:[%s1085_s25 + $0x8] sm:$0xff] (%p29_p3)  ;;  %v154_v2 = vld [vmem:[%s1085_s25 + $0x10] sm:$0xff] (%p29_p3)  ;;  %s1093_s26 = scalar_lea.vmem (%p29_p3), [#allocation2], %s978_s22 }
  0x12   : > { %v156_v3 = vld [vmem:[%s1085_s25 + $0x18] sm:$0xff] (%p29_p3)  ;;  %v158_v4 = vld [vmem:[%s1085_s25 + $0x80] sm:$0xff] (%p29_p3)  ;;  %v160_v5 = vld [vmem:[%s1085_s25 + $0x88] sm:$0xff] (%p29_p3)  ;;  %151 = vst [vmem:[%s1093_s26] sm:$0xff] (%p29_p3), %v150_v0 }
  0x13   : > { %153 = vst [vmem:[%s1093_s26 + $0x8] sm:$0xff] (%p29_p3), %v152_v1  ;;  %155 = vst [vmem:[%s1093_s26 + $0x10] sm:$0xff] (%p29_p3), %v154_v2  ;;  %v162_v6 = vld [vmem:[%s1085_s25 + $0x90] sm:$0xff] (%p29_p3)  ;;  %v164_v7 = vld [vmem:[%s1085_s25 + $0x98] sm:$0xff] (%p29_p3) }
  0x14   : > { %157 = vst [vmem:[%s1093_s26 + $0x18] sm:$0xff] (%p29_p3), %v156_v3  ;;  %159 = vst [vmem:[%s1093_s26 + $0x20] sm:$0xff] (%p29_p3), %v158_v4  ;;  %v166_v8 = vld [vmem:[%s1085_s25 + $0x100] sm:$0xff] (%p29_p3)  ;;  %v168_v9 = vld [vmem:[%s1085_s25 + $0x108] sm:$0xff] (%p29_p3) }
  0x15   : > { %161 = vst [vmem:[%s1093_s26 + $0x28] sm:$0xff] %v160_v5  ;;  %163 = vst [vmem:[%s1093_s26 + $0x30] sm:$0xff] %v162_v6  ;;  %v170_v10 = vld [vmem:[%s1085_s25 + $0x110] sm:$0xff]  ;;  %v172_v11 = vld [vmem:[%s1085_s25 + $0x118] sm:$0xff] }
  0x16   : > { %165 = vst [vmem:[%s1093_s26 + $0x38] sm:$0xff] %v164_v7  ;;  %167 = vst [vmem:[%s1093_s26 + $0x40] sm:$0xff] %v166_v8  ;;  %v174_v12 = vld [vmem:[%s1085_s25 + $0x180] sm:$0xff]  ;;  %v176_v13 = vld [vmem:[%s1085_s25 + $0x188] sm:$0xff] }
  0x17   : > { %169 = vst [vmem:[%s1093_s26 + $0x48] sm:$0xff] %v168_v9  ;;  %171 = vst [vmem:[%s1093_s26 + $0x50] sm:$0xff] %v170_v10  ;;  %v178_v14 = vld [vmem:[%s1085_s25 + $0x190] sm:$0xff]  ;;  %v180_v15 = vld [vmem:[%s1085_s25 + $0x198] sm:$0xff] }
  0x18   : > { %173 = vst [vmem:[%s1093_s26 + $0x58] sm:$0xff] %v172_v11  ;;  %175 = vst [vmem:[%s1093_s26 + $0x60] sm:$0xff] %v174_v12  ;;  %v182_v16 = vld [vmem:[%s1085_s25 + $0x200] sm:$0xff]  ;;  %v184_v17 = vld [vmem:[%s1085_s25 + $0x208] sm:$0xff] }
  0x19   : > { %177 = vst [vmem:[%s1093_s26 + $0x68] sm:$0xff] %v176_v13  ;;  %179 = vst [vmem:[%s1093_s26 + $0x70] sm:$0xff] %v178_v14  ;;  %v186_v18 = vld [vmem:[%s1085_s25 + $0x210] sm:$0xff]  ;;  %v188_v19 = vld [vmem:[%s1085_s25 + $0x218] sm:$0xff] }
  0x1a   : > { %181 = vst [vmem:[%s1093_s26 + $0x78] sm:$0xff] %v180_v15  ;;  %183 = vst [vmem:[%s1093_s26 + $0x80] sm:$0xff] %v182_v16  ;;  %v190_v20 = vld [vmem:[%s1085_s25 + $0x280] sm:$0xff]  ;;  %v192_v21 = vld [vmem:[%s1085_s25 + $0x288] sm:$0xff] }
  0x1b   : > { %185 = vst [vmem:[%s1093_s26 + $0x88] sm:$0xff] %v184_v17  ;;  %187 = vst [vmem:[%s1093_s26 + $0x90] sm:$0xff] %v186_v18  ;;  %v194_v22 = vld [vmem:[%s1085_s25 + $0x290] sm:$0xff]  ;;  %v196_v23 = vld [vmem:[%s1085_s25 + $0x298] sm:$0xff] }
  0x1c   : > { %189 = vst [vmem:[%s1093_s26 + $0x98] sm:$0xff] %v188_v19  ;;  %191 = vst [vmem:[%s1093_s26 + $0xa0] sm:$0xff] %v190_v20  ;;  %v198_v24 = vld [vmem:[%s1085_s25 + $0x300] sm:$0xff]  ;;  %v200_v25 = vld [vmem:[%s1085_s25 + $0x308] sm:$0xff] }
  0x1d   : > { %193 = vst [vmem:[%s1093_s26 + $0xa8] sm:$0xff] %v192_v21  ;;  %195 = vst [vmem:[%s1093_s26 + $0xb0] sm:$0xff] %v194_v22  ;;  %v202_v26 = vld [vmem:[%s1085_s25 + $0x310] sm:$0xff]  ;;  %v204_v27 = vld [vmem:[%s1085_s25 + $0x318] sm:$0xff] }
  0x1e   : > { %197 = vst [vmem:[%s1093_s26 + $0xb8] sm:$0xff] %v196_v23  ;;  %199 = vst [vmem:[%s1093_s26 + $0xc0] sm:$0xff] %v198_v24  ;;  %v206_v28 = vld [vmem:[%s1085_s25 + $0x380] sm:$0xff]  ;;  %v208_v29 = vld [vmem:[%s1085_s25 + $0x388] sm:$0xff] }
  0x1f   : > { %201 = vst [vmem:[%s1093_s26 + $0xc8] sm:$0xff] %v200_v25  ;;  %203 = vst [vmem:[%s1093_s26 + $0xd0] sm:$0xff] %v202_v26  ;;  %v210_v30 = vld [vmem:[%s1085_s25 + $0x390] sm:$0xff]  ;;  %v212_v31 = vld [vmem:[%s1085_s25 + $0x398] sm:$0xff] }
  0x20   : > { %205 = vst [vmem:[%s1093_s26 + $0xd8] sm:$0xff] %v204_v27  ;;  %207 = vst [vmem:[%s1093_s26 + $0xe0] sm:$0xff] %v206_v28  ;;  %v214_v32 = vld [vmem:[%s1085_s25 + $0x400] sm:$0xff]  ;;  %v216_v33 = vld [vmem:[%s1085_s25 + $0x408] sm:$0xff] }
  0x21   : > { %209 = vst [vmem:[%s1093_s26 + $0xe8] sm:$0xff] %v208_v29  ;;  %211 = vst [vmem:[%s1093_s26 + $0xf0] sm:$0xff] %v210_v30  ;;  %v218_v34 = vld [vmem:[%s1085_s25 + $0x410] sm:$0xff]  ;;  %v220_v35 = vld [vmem:[%s1085_s25 + $0x418] sm:$0xff] }
  0x22   : > { %213 = vst [vmem:[%s1093_s26 + $0xf8] sm:$0xff] %v212_v31  ;;  %215 = vst [vmem:[%s1093_s26 + $0x100] sm:$0xff] %v214_v32  ;;  %v222_v36 = vld [vmem:[%s1085_s25 + $0x480] sm:$0xff]  ;;  %v224_v37 = vld [vmem:[%s1085_s25 + $0x488] sm:$0xff] }
  0x23   : > { %217 = vst [vmem:[%s1093_s26 + $0x108] sm:$0xff] %v216_v33  ;;  %219 = vst [vmem:[%s1093_s26 + $0x110] sm:$0xff] %v218_v34  ;;  %v226_v38 = vld [vmem:[%s1085_s25 + $0x490] sm:$0xff]  ;;  %v228_v39 = vld [vmem:[%s1085_s25 + $0x498] sm:$0xff] }
  0x24   : > { %221 = vst [vmem:[%s1093_s26 + $0x118] sm:$0xff] %v220_v35  ;;  %223 = vst [vmem:[%s1093_s26 + $0x120] sm:$0xff] %v222_v36  ;;  %v230_v40 = vld [vmem:[%s1085_s25 + $0x500] sm:$0xff]  ;;  %v232_v41 = vld [vmem:[%s1085_s25 + $0x508] sm:$0xff] }
  0x25   : > { %225 = vst [vmem:[%s1093_s26 + $0x128] sm:$0xff] %v224_v37  ;;  %227 = vst [vmem:[%s1093_s26 + $0x130] sm:$0xff] %v226_v38  ;;  %v234_v42 = vld [vmem:[%s1085_s25 + $0x510] sm:$0xff]  ;;  %v236_v43 = vld [vmem:[%s1085_s25 + $0x518] sm:$0xff] }
  0x26   : > { %229 = vst [vmem:[%s1093_s26 + $0x138] sm:$0xff] %v228_v39  ;;  %231 = vst [vmem:[%s1093_s26 + $0x140] sm:$0xff] %v230_v40  ;;  %v238_v44 = vld [vmem:[%s1085_s25 + $0x580] sm:$0xff]  ;;  %v240_v45 = vld [vmem:[%s1085_s25 + $0x588] sm:$0xff] }
  0x27   : > { %233 = vst [vmem:[%s1093_s26 + $0x148] sm:$0xff] %v232_v41  ;;  %235 = vst [vmem:[%s1093_s26 + $0x150] sm:$0xff] %v234_v42  ;;  %v242_v46 = vld [vmem:[%s1085_s25 + $0x590] sm:$0xff]  ;;  %v244_v47 = vld [vmem:[%s1085_s25 + $0x598] sm:$0xff] }
  0x28   : > { %237 = vst [vmem:[%s1093_s26 + $0x158] sm:$0xff] %v236_v43  ;;  %239 = vst [vmem:[%s1093_s26 + $0x160] sm:$0xff] %v238_v44  ;;  %v246_v48 = vld [vmem:[%s1085_s25 + $0x600] sm:$0xff]  ;;  %v248_v49 = vld [vmem:[%s1085_s25 + $0x608] sm:$0xff] }
  0x29   : > { %241 = vst [vmem:[%s1093_s26 + $0x168] sm:$0xff] %v240_v45  ;;  %243 = vst [vmem:[%s1093_s26 + $0x170] sm:$0xff] %v242_v46  ;;  %v250_v50 = vld [vmem:[%s1085_s25 + $0x610] sm:$0xff]  ;;  %v252_v51 = vld [vmem:[%s1085_s25 + $0x618] sm:$0xff] }
  0x2a   : > { %245 = vst [vmem:[%s1093_s26 + $0x178] sm:$0xff] %v244_v47  ;;  %247 = vst [vmem:[%s1093_s26 + $0x180] sm:$0xff] %v246_v48  ;;  %v254_v52 = vld [vmem:[%s1085_s25 + $0x680] sm:$0xff]  ;;  %v256_v53 = vld [vmem:[%s1085_s25 + $0x688] sm:$0xff] }
  0x2b   : > { %249 = vst [vmem:[%s1093_s26 + $0x188] sm:$0xff] %v248_v49  ;;  %251 = vst [vmem:[%s1093_s26 + $0x190] sm:$0xff] %v250_v50  ;;  %v258_v54 = vld [vmem:[%s1085_s25 + $0x690] sm:$0xff]  ;;  %v260_v55 = vld [vmem:[%s1085_s25 + $0x698] sm:$0xff] }
  0x2c   : > { %253 = vst [vmem:[%s1093_s26 + $0x198] sm:$0xff] %v252_v51  ;;  %255 = vst [vmem:[%s1093_s26 + $0x1a0] sm:$0xff] %v254_v52 }
  0x2d   : > { %257 = vst [vmem:[%s1093_s26 + $0x1a8] sm:$0xff] %v256_v53  ;;  %259 = vst [vmem:[%s1093_s26 + $0x1b0] sm:$0xff] %v258_v54 }
  0x2e   : > { %261 = vst [vmem:[%s1093_s26 + $0x1b8] sm:$0xff] %v260_v55 }
  0x2f PF: > { %p908_p5 = scmp.ge.s32.totalorder %s1028_s14, 1  ;;  %p266_p6 = scmp.lt.s32.totalorder %s1028_s14, 5 }
  0x31   : > { %p267_p7 = pnand %p908_p5, %p266_p6 }
  0x32   : > { %s273_s27 = sand.u32 (!%p267_p7), 1, %s1020_s12   ;;  %v1030_v56 = vmov (!%p267_p7), 0   ;;  %v361_v57 = vld [vmem:[%s1318_s2] sm:$0xff] (!%p267_p7)  ;;  %vm643_vm0 = vcmask (!%p267_p7), 1045504   ;;  %vm639_vm1 = vcmask (!%p267_p7), 883712   ;;  %s909_s7 = sshll.u32 (!%p267_p7), %s902_s15, 3 }
  0x33   : > { %270 = sbr.rel (%p267_p7) target bundleno = 331 (0x14b), region = 51  ;;  %700 = vmatprep.mubr.bf16.mxu0 (!%p267_p7), %v1030_v56  ;;  %741 = vmatprep.mubr.bf16.mxu1 (!%p267_p7), %v1030_v56  ;;  %p298_p8 = scmp.lt.s32.totalorder (!%p267_p7), %s909_s7, 31 }
  0x34   : > { %s979_s28 = smul.u32 (!%p267_p7), 448, %s273_s27  ;;  %1005 = vset.pattern.permute.xlu0 (!%p267_p7), %v1030_v56 }
  0x35   : > { %364 = vperm.xlu0 (!%p267_p7), %1005, %v361_v57  }
  0x36   : > { %s1210_s4 = scalar_lea.vmem (!%p267_p7), [#allocation2], %s979_s28 }
  0x37   : > { %v305_v58 = vld [vmem:[%s1210_s4] sm:$0xff] (!%p267_p7)  ;;  %v306_v60 = vld [vmem:[%s1210_s4 + $0x8] sm:$0xff] (!%p267_p7)  ;;  %v307_v50 = vld [vmem:[%s1210_s4 + $0x10] sm:$0xff] (!%p267_p7) }
  0x38   : > { %v309_v59 = vld [vmem:[%s1210_s4 + $0x20] sm:$0xff] (!%p267_p7)  ;;  %v310_v62 = vld [vmem:[%s1210_s4 + $0x28] sm:$0xff] (!%p267_p7)  ;;  %v311_v51 = vld [vmem:[%s1210_s4 + $0x30] sm:$0xff] (!%p267_p7) }
  0x39   : > { %v912_v61 = vcombine.high (!%p267_p7), %v305_v58, %v309_v59  ;;  %v911_v63 = vcombine.low (!%p267_p7), %v305_v58, %v309_v59  ;;  %v313_v0 = vld [vmem:[%s1210_s4 + $0x40] sm:$0xff] (!%p267_p7)  ;;  %v914_v2 = vcombine.high (!%p267_p7), %v306_v60, %v310_v62  ;;  %v913_v3 = vcombine.low (!%p267_p7), %v306_v60, %v310_v62  ;;  %v314_v5 = vld [vmem:[%s1210_s4 + $0x48] sm:$0xff] (!%p267_p7)  ;;  %v308_v52 = vld [vmem:[%s1210_s4 + $0x18] sm:$0xff] (!%p267_p7) }
  0x3a   : > { %v317_v1 = vld [vmem:[%s1210_s4 + $0x60] sm:$0xff]  ;;  %v318_v6 = vld [vmem:[%s1210_s4 + $0x68] sm:$0xff]  ;;  %v312_v53 = vld [vmem:[%s1210_s4 + $0x38] sm:$0xff]  ;;  %v916_v55 = vcombine.high %v307_v50, %v311_v51  ;;  %s1324_s7 = smov (!%p298_p8, %s909_s7), 31 }
  0x3b   : > { %v920_v4 = vcombine.high %v313_v0, %v317_v1  ;;  %v321_v7 = vld [vmem:[%s1210_s4 + $0x80] sm:$0xff]  ;;  %668 = vmatprep.subr.bf16.mxu0 %v912_v61  ;;  %v922_v8 = vcombine.high %v314_v5, %v318_v6  ;;  %v322_v10 = vld [vmem:[%s1210_s4 + $0x88] sm:$0xff]  ;;  %709 = vmatprep.subr.bf16.mxu1 %v914_v2  ;;  %v919_v12 = vcombine.low %v313_v0, %v317_v1  ;;  %v315_v59 = vld [vmem:[%s1210_s4 + $0x50] sm:$0xff]  ;;  %s910_s8 = sshll.u32 %s1324_s7, 3 }
  0x3c   : > { %v325_v9 = vld [vmem:[%s1210_s4 + $0xa0] sm:$0xff]  ;;  %v326_v11 = vld [vmem:[%s1210_s4 + $0xa8] sm:$0xff]  ;;  %669 = vmatpush1.bf16.msra.mxu0 %v911_v63  ;;  %710 = vmatpush1.bf16.msra.mxu1 %v913_v3  ;;  %v921_v13 = vcombine.low %v314_v5, %v318_v6  ;;  %v918_v58 = vcombine.high %v308_v52, %v312_v53  ;;  %v319_v60 = vld [vmem:[%s1210_s4 + $0x70] sm:$0xff]  ;;  %v915_v0 = vcombine.low %v307_v50, %v311_v51  ;;  %s1296_s11 = scalar_lea.vmem %s1319_s3, %s910_s8 }
  0x3d   : > { %670 = vmatprep.subr.bf16.mxu0 %v920_v4  ;;  %v928_v14 = vcombine.high %v321_v7, %v325_v9  ;;  %711 = vmatprep.subr.bf16.mxu1 %v922_v8  ;;  %v930_v15 = vcombine.high %v322_v10, %v326_v11  ;;  %v329_v16 = vld [vmem:[%s1210_s4 + $0xc0] sm:$0xff]  ;;  %v330_v18 = vld [vmem:[%s1210_s4 + $0xc8] sm:$0xff]  ;;  %v927_v20 = vcombine.low %v321_v7, %v325_v9  ;;  %v316_v61 = vld [vmem:[%s1210_s4 + $0x58] sm:$0xff] }
  0x3e   : > { %v333_v17 = vld [vmem:[%s1210_s4 + $0xe0] sm:$0xff]  ;;  %v334_v19 = vld [vmem:[%s1210_s4 + $0xe8] sm:$0xff]  ;;  %v929_v21 = vcombine.low %v322_v10, %v326_v11  ;;  %v320_v62 = vld [vmem:[%s1210_s4 + $0x78] sm:$0xff]  ;;  %v917_v1 = vcombine.low %v308_v52, %v312_v53  ;;  %v924_v2 = vcombine.high %v315_v59, %v319_v60  ;;  %v923_v8 = vcombine.low %v315_v59, %v319_v60 }
  0x3f   : > { %v936_v22 = vcombine.high %v329_v16, %v333_v17  ;;  %v938_v23 = vcombine.high %v330_v18, %v334_v19  ;;  %v337_v24 = vld [vmem:[%s1210_s4 + $0x100] sm:$0xff]  ;;  %v338_v26 = vld [vmem:[%s1210_s4 + $0x108] sm:$0xff]  ;;  %v935_v28 = vcombine.low %v329_v16, %v333_v17  ;;  %v937_v29 = vcombine.low %v330_v18, %v334_v19  ;;  %v323_v4 = vld [vmem:[%s1210_s4 + $0x90] sm:$0xff] }
  0x40   : > { %671 = vmatpush1.bf16.msra.mxu0 %v919_v12  ;;  %712 = vmatpush1.bf16.msra.mxu1 %v921_v13  ;;  %v341_v25 = vld [vmem:[%s1210_s4 + $0x120] sm:$0xff]  ;;  %v342_v27 = vld [vmem:[%s1210_s4 + $0x128] sm:$0xff]  ;;  %v926_v3 = vcombine.high %v316_v61, %v320_v62  ;;  %v327_v5 = vld [vmem:[%s1210_s4 + $0xb0] sm:$0xff]  ;;  %v925_v9 = vcombine.low %v316_v61, %v320_v62 }
  0x41   : > { %672 = vmatprep.subr.bf16.mxu0 %v928_v14  ;;  %713 = vmatprep.subr.bf16.mxu1 %v930_v15  ;;  %v944_v30 = vcombine.high %v337_v24, %v341_v25  ;;  %v946_v31 = vcombine.high %v338_v26, %v342_v27  ;;  %v345_v32 = vld [vmem:[%s1210_s4 + $0x140] sm:$0xff]  ;;  %v346_v34 = vld [vmem:[%s1210_s4 + $0x148] sm:$0xff]  ;;  %v943_v36 = vcombine.low %v337_v24, %v341_v25  ;;  %v324_v6 = vld [vmem:[%s1210_s4 + $0x98] sm:$0xff] }
  0x42   : > { %v349_v33 = vld [vmem:[%s1210_s4 + $0x160] sm:$0xff]  ;;  %v350_v35 = vld [vmem:[%s1210_s4 + $0x168] sm:$0xff]  ;;  %v945_v37 = vcombine.low %v338_v26, %v342_v27  ;;  %v328_v7 = vld [vmem:[%s1210_s4 + $0xb8] sm:$0xff]  ;;  %v932_v10 = vcombine.high %v323_v4, %v327_v5  ;;  %v931_v16 = vcombine.low %v323_v4, %v327_v5 }
  0x43   : > { %v952_v38 = vcombine.high %v345_v32, %v349_v33  ;;  %v954_v39 = vcombine.high %v346_v34, %v350_v35  ;;  %v353_v40 = vld [vmem:[%s1210_s4 + $0x180] sm:$0xff]  ;;  %v354_v42 = vld [vmem:[%s1210_s4 + $0x188] sm:$0xff]  ;;  %v951_v44 = vcombine.low %v345_v32, %v349_v33  ;;  %v953_v45 = vcombine.low %v346_v34, %v350_v35  ;;  %v331_v12 = vld [vmem:[%s1210_s4 + $0xd0] sm:$0xff] }
  0x44   : > { %673 = vmatpush1.bf16.msra.mxu0 %v927_v20  ;;  %714 = vmatpush1.bf16.msra.mxu1 %v929_v21  ;;  %v357_v41 = vld [vmem:[%s1210_s4 + $0x1a0] sm:$0x33]  ;;  %v358_v43 = vld [vmem:[%s1210_s4 + $0x1a8] sm:$0x33]  ;;  %v934_v11 = vcombine.high %v324_v6, %v328_v7  ;;  %v335_v13 = vld [vmem:[%s1210_s4 + $0xf0] sm:$0xff]  ;;  %v933_v17 = vcombine.low %v324_v6, %v328_v7 }
  0x45   : > { %674 = vmatprep.subr.bf16.mxu0 %v936_v22  ;;  %715 = vmatprep.subr.bf16.mxu1 %v938_v23  ;;  %v960_v46 = vcombine.high %v353_v40, %v357_v41  ;;  %v959_v47 = vcombine.low %v353_v40, %v357_v41  ;;  %v962_v48 = vcombine.high %v354_v42, %v358_v43  ;;  %v1255_v63 = vld [vmem:[%s1317_s1] sm:$0xf]  ;;  %v332_v14 = vld [vmem:[%s1210_s4 + $0xd8] sm:$0xff]  ;;  %v339_v20 = vld [vmem:[%s1210_s4 + $0x110] sm:$0xff] }
  0x46   : > { %v961_v49 = vcombine.low %v354_v42, %v358_v43  ;;  %v336_v15 = vld [vmem:[%s1210_s4 + $0xf8] sm:$0xff]  ;;  %v940_v18 = vcombine.high %v331_v12, %v335_v13  ;;  %v343_v21 = vld [vmem:[%s1210_s4 + $0x130] sm:$0xff]  ;;  %v939_v24 = vcombine.low %v331_v12, %v335_v13 }
  0x47   : > { %v645_v54 = vsel %vm643_vm0, %v959_v47, 0  ;;  %v942_v19 = vcombine.high %v332_v14, %v336_v15  ;;  %v340_v22 = vld [vmem:[%s1210_s4 + $0x118] sm:$0xff]  ;;  %v948_v25 = vcombine.high %v339_v20, %v343_v21  ;;  %v347_v27 = vld [vmem:[%s1210_s4 + $0x150] sm:$0xff] }
  0x48   : > { %675 = vmatpush1.bf16.msra.mxu0 %v935_v28  ;;  %716 = vmatpush1.bf16.msra.mxu1 %v937_v29  ;;  %v651_v57 = vsel %vm643_vm0, %v961_v49, 0  ;;  %v344_v23 = vld [vmem:[%s1210_s4 + $0x138] sm:$0xff]  ;;  %v351_v28 = vld [vmem:[%s1210_s4 + $0x170] sm:$0xff] }
  0x49   : > { %676 = vmatprep.subr.bf16.mxu0 %v944_v30  ;;  %717 = vmatprep.subr.bf16.mxu1 %v946_v31  ;;  %v950_v26 = vcombine.high %v340_v22, %v344_v23  ;;  %v348_v29 = vld [vmem:[%s1210_s4 + $0x158] sm:$0xff]  ;;  %v947_v31 = vcombine.low %v339_v20, %v343_v21  ;;  %v949_v32 = vcombine.low %v340_v22, %v344_v23  ;;  %v355_v35 = vld [vmem:[%s1210_s4 + $0x190] sm:$0xff] }
  0x4a   : > { %v352_v30 = vld [vmem:[%s1210_s4 + $0x178] sm:$0xff]  ;;  %v956_v33 = vcombine.high %v347_v27, %v351_v28 }
  0x4b   : > { %v958_v34 = vcombine.high %v348_v29, %v352_v30  ;;  %v957_v40 = vcombine.low %v348_v29, %v352_v30 }
  0x4c   : > { %677 = vmatpush1.bf16.msra.mxu0 %v943_v36  ;;  %718 = vmatpush1.bf16.msra.mxu1 %v945_v37  ;;  %v359_v36 = vld [vmem:[%s1210_s4 + $0x1b0] sm:$0x33]  ;;  %v356_v37 = vld [vmem:[%s1210_s4 + $0x198] sm:$0xff] }
  0x4d   : > { %678 = vmatprep.subr.bf16.mxu0 %v952_v38  ;;  %719 = vmatprep.subr.bf16.mxu1 %v954_v39  ;;  %v360_v38 = vld [vmem:[%s1210_s4 + $0x1b8] sm:$0x33]  ;;  %v955_v39 = vcombine.low %v347_v27, %v351_v28  ;;  %v964_v41 = vcombine.high %v355_v35, %v359_v36  ;;  %v963_v42 = vcombine.low %v355_v35, %v359_v36 }
  0x4e   : > { %v966_v43 = vcombine.high %v356_v37, %v360_v38 }
  0x50   : > { %679 = vmatpush1.bf16.msra.mxu0 %v951_v44  ;;  %720 = vmatpush1.bf16.msra.mxu1 %v953_v45  ;;  %v965_v44 = vcombine.low %v356_v37, %v360_v38  ;;  %v657_v45 = vsel %vm643_vm0, %v963_v42, 0 }
  0x51   : > { %967 = vmatprep.subr.msk.bf16.mxu0 %vm643_vm0, %v960_v46  ;;  %969 = vmatprep.subr.msk.bf16.mxu1 %vm643_vm0, %v962_v48 }
  0x52   : > { %v663_v46 = vsel %vm643_vm0, %v965_v44, 0 }
  0x54   : > { %681 = vmatpush1.bf16.msra.mxu0 %v645_v54  ;;  %722 = vmatpush1.bf16.msra.mxu1 %v651_v57 }
  0x55   : > { %750 = vmatprep.subr.bf16.mxu0 %v916_v55  ;;  %791 = vmatprep.subr.bf16.mxu1 %v918_v58 }
  0x57   : > { %968 = vmatmul.mubr.msk.bf16.vlgmr.msra.gmra.mrb[0].mxu0 %vm639_vm1, %v1255_v63  ;;  %970 = vmatmul.mubr.msk.bf16.vlgmr.msra.gmra.mrb[0].mxu1 %vm639_vm1, %v1255_v63 }
  0x58   : > { %751 = vmatpush1.bf16.msra.mxu0 %v915_v0  ;;  %792 = vmatpush1.bf16.msra.mxu1 %v917_v1 }
  0x59   : > { %752 = vmatprep.subr.bf16.mxu0 %v924_v2  ;;  %793 = vmatprep.subr.bf16.mxu1 %v926_v3 }
  0x5a   : > { %782 = vmatprep.mubr.bf16.mxu0 %v1030_v56  ;;  %823 = vmatprep.mubr.bf16.mxu1 %v1030_v56  ;;  %v941_v56 = vcombine.low %v332_v14, %v336_v15 }
  0x5c   : > { %753 = vmatpush1.bf16.msra.mxu0 %v923_v8  ;;  %794 = vmatpush1.bf16.msra.mxu1 %v925_v9 }
  0x5d   : > { %754 = vmatprep.subr.bf16.mxu0 %v932_v10  ;;  %795 = vmatprep.subr.bf16.mxu1 %v934_v11 }
  0x60   : > { %755 = vmatpush1.bf16.msra.mxu0 %v931_v16  ;;  %796 = vmatpush1.bf16.msra.mxu1 %v933_v17 }
  0x61   : > { %756 = vmatprep.subr.bf16.mxu0 %v940_v18  ;;  %797 = vmatprep.subr.bf16.mxu1 %v942_v19 }
  0x64   : > { %757 = vmatpush1.bf16.msra.mxu0 %v939_v24  ;;  %798 = vmatpush1.bf16.msra.mxu1 %v941_v56 }
  0x65   : > { %758 = vmatprep.subr.bf16.mxu0 %v948_v25  ;;  %799 = vmatprep.subr.bf16.mxu1 %v950_v26 }
  0x68   : > { %759 = vmatpush1.bf16.msra.mxu0 %v947_v31  ;;  %800 = vmatpush1.bf16.msra.mxu1 %v949_v32 }
  0x69   : > { %760 = vmatprep.subr.bf16.mxu0 %v956_v33  ;;  %801 = vmatprep.subr.bf16.mxu1 %v958_v34 }
  0x6c   : > { %761 = vmatpush1.bf16.msra.mxu0 %v955_v39  ;;  %802 = vmatpush1.bf16.msra.mxu1 %v957_v40 }
  0x6d   : > { %971 = vmatprep.subr.msk.bf16.mxu0 %vm643_vm0, %v964_v41  ;;  %973 = vmatprep.subr.msk.bf16.mxu1 %vm643_vm0, %v966_v43 }
  0x70   : > { %763 = vmatpush1.bf16.msra.mxu0 %v657_v45  ;;  %804 = vmatpush1.bf16.msra.mxu1 %v663_v46 }
  0x73   : > { %972 = vmatmul.mubr.msk.bf16.vlgmr.msra.gmra.mrb[4].mxu0 %vm639_vm1, %v1255_v63  ;;  %974 = vmatmul.mubr.msk.bf16.vlgmr.msra.gmra.mrb[4].mxu1 %vm639_vm1, %v1255_v63 }
  0xb4   : > { %v365_v47 = vpop.permute.xlu0 %364 }
 0x12a   : > { %v702_v48 = vpop.f32.mrb[0].mxu0  ;;  %v743_v49 = vpop.f32.mrb[0].mxu1 }
 0x12b   : > { %v703_v50 = vadd.f32 %v702_v48, %v365_v47  ;;  %v704_v51 = vpop.f32.mrb[1].mxu0  ;;  %v744_v52 = vadd.f32 %v743_v49, %v365_v47  ;;  %v745_v54 = vpop.f32.mrb[1].mxu1 }
 0x12c   : > { %v705_v53 = vadd.f32 %v704_v51, %v365_v47  ;;  %v706_v55 = vpop.f32.mrb[2].mxu0  ;;  %v746_v57 = vadd.f32 %v745_v54, %v365_v47  ;;  %v747_v58 = vpop.f32.mrb[2].mxu1 }
 0x12d   : > { %832 = vst [vmem:[%s1296_s11] sm:$0xff] %v703_v50  ;;  %v707_v59 = vpop.f32.mrb[3].mxu0  ;;  %834 = vst [vmem:[%s1296_s11 + $0x10] sm:$0xff] %v744_v52  ;;  %v748_v60 = vpop.f32.mrb[3].mxu1 }
 0x12e   : > { %833 = vst [vmem:[%s1296_s11 + $0x8] sm:$0xff] %v705_v53  ;;  %835 = vst [vmem:[%s1296_s11 + $0x18] sm:$0xff] %v746_v57 }
 0x146   : > { %v784_v61 = vpop.f32.mrb[4].mxu0  ;;  %v825_v63 = vpop.f32.mrb[4].mxu1 }
 0x147   : > { %v785_v62 = vadd.f32 %v784_v61, %v365_v47  ;;  %v786_v0 = vpop.f32.mrb[5].mxu0  ;;  %v826_v1 = vadd.f32 %v825_v63, %v365_v47  ;;  %v827_v3 = vpop.f32.mrb[5].mxu1 }
 0x148   : > { %v787_v2 = vadd.f32 %v786_v0, %v365_v47  ;;  %v788_v4 = vpop.f32.mrb[6].mxu0  ;;  %v828_v5 = vadd.f32 %v827_v3, %v365_v47  ;;  %v829_v6 = vpop.f32.mrb[6].mxu1 }
 0x149   : > { %836 = vst [vmem:[%s1296_s11 + $0x20] sm:$0xff] %v785_v62  ;;  %v789_v7 = vpop.f32.mrb[7].mxu0  ;;  %838 = vst [vmem:[%s1296_s11 + $0x30] sm:$0xff] %v826_v1  ;;  %v830_v8 = vpop.f32.mrb[7].mxu1 }
 0x14a   : > { %837 = vst [vmem:[%s1296_s11 + $0x28] sm:$0xff] %v787_v2  ;;  %839 = vst [vmem:[%s1296_s11 + $0x38] sm:$0xff] %v828_v5 }
 0x14b PF: > { %p10_p9 = scmp.ge.s32.totalorder %s1068_s16, 6   ;;  %s1320_s12 = smov %s1024_s13 }
 0x14c   : > { %s1321_s13 = smov %s1077_s19  ;;  %s1322_s14 = smov %s1068_s16 }
 0x14d   :  { %12 = sbr.rel (!%p10_p9) target bundleno = 2 (0x2), region = 90 }

// kernel: _lambda_.6
= control target key start
LH: loop header
LB: loop body
LE: loop exit
PB: predicated region body
PF: predicated region fallthrough
CT: control target
= control target key end

     0   :  { %s1549_s12 = smov 0   ;;  %s1551_s13 = smov 0   ;;  %s1977_s0 = inlined_call_operand.vmem [shape: bf16[216,4096], index: 0, kind: input, shape index: {}]   ;;  %s1978_s1 = inlined_call_operand.vmem [shape: bf16[8,216], index: 1, kind: input, shape index: {}]   ;;  %s1979_s2 = inlined_call_operand.vmem [shape: f32[8,1], index: 2, kind: input, shape index: {}]   ;;  %s1980_s3 = inlined_call_operand.vmem [shape: f32[8,4096], index: 3, kind: output, shape index: {}]  }
   0x1   :  { %s1553_s14 = smov 0  }
   0x2 LB: > { %s1332_s15 = sadd.s32 4294967295, %s1526_s14   ;;  %s1566_s16 = sadd.s32 1, %s1526_s14   ;;  %s1526_s14 = sphi %s1553_s14, %s1983_s14   ;;  %s1522_s13 = sphi %s1551_s13, %s1982_s13   ;;  %s1518_s12 = sphi %s1549_s12, %s1981_s12  }
   0x3   : > { %s17_s17 = ssub.s32 %s1526_s14, %s1566_s16  ;;  %s20_s18 = sadd.s32 1, %s1522_s13 }
   0x4   : > { %p18_p0 = scmp.eq.s32.totalorder %s17_s17, 0  ;;  %p27_p1 = scmp.ne.s32.totalorder %s1522_s13, %s1518_s12 }
   0x5   : > { %p28_p2 = scmp.eq.s32.totalorder %s1526_s14, 0  ;;  %p1335_p4 = scmp.ge.s32.totalorder %s1526_s14, 4 }
   0x6   : > { %s1575_s19 = scalar_select %p18_p0, %s1522_s13, %s20_s18  }
   0x7   : > { %p29_p3 = por %p28_p2, %p27_p1  ;;  %127 = sbr.rel (%p1335_p4) target bundleno = 73 (0x49), region = 24 }
   0xe   : > { %130 = sbr.rel (!%p29_p3) target bundleno = 73 (0x49), region = 28  ;;  %s132_s20 = sand.u32 (%p29_p3), 1, %s1522_s13  }
   0xf   : > { %s1465_s21 = sshll.u32 (%p29_p3), %s1526_s14, 5  ;;  %s1466_s22 = smul.u32 (%p29_p3), 864, %s132_s20 }
  0x10   : > { %s1583_s25 = scalar_lea.vmem (%p29_p3), %s1977_s0, %s1465_s21 }
  0x11   : > { %v150_v0 = vld [vmem:[%s1583_s25] sm:$0xff] (%p29_p3)  ;;  %v152_v1 = vld [vmem:[%s1583_s25 + $0x8] sm:$0xff] (%p29_p3)  ;;  %v154_v2 = vld [vmem:[%s1583_s25 + $0x10] sm:$0xff] (%p29_p3)  ;;  %s1591_s26 = scalar_lea.vmem (%p29_p3), [#allocation2], %s1466_s22 }
  0x12   : > { %v156_v3 = vld [vmem:[%s1583_s25 + $0x18] sm:$0xff] (%p29_p3)  ;;  %v158_v4 = vld [vmem:[%s1583_s25 + $0x80] sm:$0xff] (%p29_p3)  ;;  %v160_v5 = vld [vmem:[%s1583_s25 + $0x88] sm:$0xff] (%p29_p3)  ;;  %151 = vst [vmem:[%s1591_s26] sm:$0xff] (%p29_p3), %v150_v0 }
  0x13   : > { %153 = vst [vmem:[%s1591_s26 + $0x8] sm:$0xff] (%p29_p3), %v152_v1  ;;  %155 = vst [vmem:[%s1591_s26 + $0x10] sm:$0xff] (%p29_p3), %v154_v2  ;;  %v162_v6 = vld [vmem:[%s1583_s25 + $0x90] sm:$0xff] (%p29_p3)  ;;  %v164_v7 = vld [vmem:[%s1583_s25 + $0x98] sm:$0xff] (%p29_p3) }
  0x14   : > { %157 = vst [vmem:[%s1591_s26 + $0x18] sm:$0xff] (%p29_p3), %v156_v3  ;;  %159 = vst [vmem:[%s1591_s26 + $0x20] sm:$0xff] (%p29_p3), %v158_v4  ;;  %v166_v8 = vld [vmem:[%s1583_s25 + $0x100] sm:$0xff] (%p29_p3)  ;;  %v168_v9 = vld [vmem:[%s1583_s25 + $0x108] sm:$0xff] (%p29_p3) }
  0x15   : > { %161 = vst [vmem:[%s1591_s26 + $0x28] sm:$0xff] %v160_v5  ;;  %163 = vst [vmem:[%s1591_s26 + $0x30] sm:$0xff] %v162_v6  ;;  %v170_v10 = vld [vmem:[%s1583_s25 + $0x110] sm:$0xff]  ;;  %v172_v11 = vld [vmem:[%s1583_s25 + $0x118] sm:$0xff] }
  0x16   : > { %165 = vst [vmem:[%s1591_s26 + $0x38] sm:$0xff] %v164_v7  ;;  %167 = vst [vmem:[%s1591_s26 + $0x40] sm:$0xff] %v166_v8  ;;  %v174_v12 = vld [vmem:[%s1583_s25 + $0x180] sm:$0xff]  ;;  %v176_v13 = vld [vmem:[%s1583_s25 + $0x188] sm:$0xff] }
  0x17   : > { %169 = vst [vmem:[%s1591_s26 + $0x48] sm:$0xff] %v168_v9  ;;  %171 = vst [vmem:[%s1591_s26 + $0x50] sm:$0xff] %v170_v10  ;;  %v178_v14 = vld [vmem:[%s1583_s25 + $0x190] sm:$0xff]  ;;  %v180_v15 = vld [vmem:[%s1583_s25 + $0x198] sm:$0xff] }
  0x18   : > { %173 = vst [vmem:[%s1591_s26 + $0x58] sm:$0xff] %v172_v11  ;;  %175 = vst [vmem:[%s1591_s26 + $0x60] sm:$0xff] %v174_v12  ;;  %v182_v16 = vld [vmem:[%s1583_s25 + $0x200] sm:$0xff]  ;;  %v184_v17 = vld [vmem:[%s1583_s25 + $0x208] sm:$0xff] }
  0x19   : > { %177 = vst [vmem:[%s1591_s26 + $0x68] sm:$0xff] %v176_v13  ;;  %179 = vst [vmem:[%s1591_s26 + $0x70] sm:$0xff] %v178_v14  ;;  %v186_v18 = vld [vmem:[%s1583_s25 + $0x210] sm:$0xff]  ;;  %v188_v19 = vld [vmem:[%s1583_s25 + $0x218] sm:$0xff] }
  0x1a   : > { %181 = vst [vmem:[%s1591_s26 + $0x78] sm:$0xff] %v180_v15  ;;  %183 = vst [vmem:[%s1591_s26 + $0x80] sm:$0xff] %v182_v16  ;;  %v190_v20 = vld [vmem:[%s1583_s25 + $0x280] sm:$0xff]  ;;  %v192_v21 = vld [vmem:[%s1583_s25 + $0x288] sm:$0xff] }
  0x1b   : > { %185 = vst [vmem:[%s1591_s26 + $0x88] sm:$0xff] %v184_v17  ;;  %187 = vst [vmem:[%s1591_s26 + $0x90] sm:$0xff] %v186_v18  ;;  %v194_v22 = vld [vmem:[%s1583_s25 + $0x290] sm:$0xff]  ;;  %v196_v23 = vld [vmem:[%s1583_s25 + $0x298] sm:$0xff] }
  0x1c   : > { %189 = vst [vmem:[%s1591_s26 + $0x98] sm:$0xff] %v188_v19  ;;  %191 = vst [vmem:[%s1591_s26 + $0xa0] sm:$0xff] %v190_v20  ;;  %v198_v24 = vld [vmem:[%s1583_s25 + $0x300] sm:$0xff]  ;;  %v200_v25 = vld [vmem:[%s1583_s25 + $0x308] sm:$0xff] }
  0x1d   : > { %193 = vst [vmem:[%s1591_s26 + $0xa8] sm:$0xff] %v192_v21  ;;  %195 = vst [vmem:[%s1591_s26 + $0xb0] sm:$0xff] %v194_v22  ;;  %v202_v26 = vld [vmem:[%s1583_s25 + $0x310] sm:$0xff]  ;;  %v204_v27 = vld [vmem:[%s1583_s25 + $0x318] sm:$0xff] }
  0x1e   : > { %197 = vst [vmem:[%s1591_s26 + $0xb8] sm:$0xff] %v196_v23  ;;  %199 = vst [vmem:[%s1591_s26 + $0xc0] sm:$0xff] %v198_v24  ;;  %v206_v28 = vld [vmem:[%s1583_s25 + $0x380] sm:$0xff]  ;;  %v208_v29 = vld [vmem:[%s1583_s25 + $0x388] sm:$0xff] }
  0x1f   : > { %201 = vst [vmem:[%s1591_s26 + $0xc8] sm:$0xff] %v200_v25  ;;  %203 = vst [vmem:[%s1591_s26 + $0xd0] sm:$0xff] %v202_v26  ;;  %v210_v30 = vld [vmem:[%s1583_s25 + $0x390] sm:$0xff]  ;;  %v212_v31 = vld [vmem:[%s1583_s25 + $0x398] sm:$0xff] }
  0x20   : > { %205 = vst [vmem:[%s1591_s26 + $0xd8] sm:$0xff] %v204_v27  ;;  %207 = vst [vmem:[%s1591_s26 + $0xe0] sm:$0xff] %v206_v28  ;;  %v214_v32 = vld [vmem:[%s1583_s25 + $0x400] sm:$0xff]  ;;  %v216_v33 = vld [vmem:[%s1583_s25 + $0x408] sm:$0xff] }
  0x21   : > { %209 = vst [vmem:[%s1591_s26 + $0xe8] sm:$0xff] %v208_v29  ;;  %211 = vst [vmem:[%s1591_s26 + $0xf0] sm:$0xff] %v210_v30  ;;  %v218_v34 = vld [vmem:[%s1583_s25 + $0x410] sm:$0xff]  ;;  %v220_v35 = vld [vmem:[%s1583_s25 + $0x418] sm:$0xff] }
  0x22   : > { %213 = vst [vmem:[%s1591_s26 + $0xf8] sm:$0xff] %v212_v31  ;;  %215 = vst [vmem:[%s1591_s26 + $0x100] sm:$0xff] %v214_v32  ;;  %v222_v36 = vld [vmem:[%s1583_s25 + $0x480] sm:$0xff]  ;;  %v224_v37 = vld [vmem:[%s1583_s25 + $0x488] sm:$0xff] }
  0x23   : > { %217 = vst [vmem:[%s1591_s26 + $0x108] sm:$0xff] %v216_v33  ;;  %219 = vst [vmem:[%s1591_s26 + $0x110] sm:$0xff] %v218_v34  ;;  %v226_v38 = vld [vmem:[%s1583_s25 + $0x490] sm:$0xff]  ;;  %v228_v39 = vld [vmem:[%s1583_s25 + $0x498] sm:$0xff] }
  0x24   : > { %221 = vst [vmem:[%s1591_s26 + $0x118] sm:$0xff] %v220_v35  ;;  %223 = vst [vmem:[%s1591_s26 + $0x120] sm:$0xff] %v222_v36  ;;  %v230_v40 = vld [vmem:[%s1583_s25 + $0x500] sm:$0xff]  ;;  %v232_v41 = vld [vmem:[%s1583_s25 + $0x508] sm:$0xff] }
  0x25   : > { %225 = vst [vmem:[%s1591_s26 + $0x128] sm:$0xff] %v224_v37  ;;  %227 = vst [vmem:[%s1591_s26 + $0x130] sm:$0xff] %v226_v38  ;;  %v234_v42 = vld [vmem:[%s1583_s25 + $0x510] sm:$0xff]  ;;  %v236_v43 = vld [vmem:[%s1583_s25 + $0x518] sm:$0xff] }
  0x26   : > { %229 = vst [vmem:[%s1591_s26 + $0x138] sm:$0xff] %v228_v39  ;;  %231 = vst [vmem:[%s1591_s26 + $0x140] sm:$0xff] %v230_v40  ;;  %v238_v44 = vld [vmem:[%s1583_s25 + $0x580] sm:$0xff]  ;;  %v240_v45 = vld [vmem:[%s1583_s25 + $0x588] sm:$0xff] }
  0x27   : > { %233 = vst [vmem:[%s1591_s26 + $0x148] sm:$0xff] %v232_v41  ;;  %235 = vst [vmem:[%s1591_s26 + $0x150] sm:$0xff] %v234_v42  ;;  %v242_v46 = vld [vmem:[%s1583_s25 + $0x590] sm:$0xff]  ;;  %v244_v47 = vld [vmem:[%s1583_s25 + $0x598] sm:$0xff] }
  0x28   : > { %237 = vst [vmem:[%s1591_s26 + $0x158] sm:$0xff] %v236_v43  ;;  %239 = vst [vmem:[%s1591_s26 + $0x160] sm:$0xff] %v238_v44  ;;  %v246_v48 = vld [vmem:[%s1583_s25 + $0x600] sm:$0xff]  ;;  %v248_v49 = vld [vmem:[%s1583_s25 + $0x608] sm:$0xff] }
  0x29   : > { %241 = vst [vmem:[%s1591_s26 + $0x168] sm:$0xff] %v240_v45  ;;  %243 = vst [vmem:[%s1591_s26 + $0x170] sm:$0xff] %v242_v46  ;;  %v250_v50 = vld [vmem:[%s1583_s25 + $0x610] sm:$0xff]  ;;  %v252_v51 = vld [vmem:[%s1583_s25 + $0x618] sm:$0xff] }
  0x2a   : > { %245 = vst [vmem:[%s1591_s26 + $0x178] sm:$0xff] %v244_v47  ;;  %247 = vst [vmem:[%s1591_s26 + $0x180] sm:$0xff] %v246_v48  ;;  %v254_v52 = vld [vmem:[%s1583_s25 + $0x680] sm:$0xff]  ;;  %v256_v53 = vld [vmem:[%s1583_s25 + $0x688] sm:$0xff] }
  0x2b   : > { %249 = vst [vmem:[%s1591_s26 + $0x188] sm:$0xff] %v248_v49  ;;  %251 = vst [vmem:[%s1591_s26 + $0x190] sm:$0xff] %v250_v50  ;;  %v258_v54 = vld [vmem:[%s1583_s25 + $0x690] sm:$0xff]  ;;  %v260_v55 = vld [vmem:[%s1583_s25 + $0x698] sm:$0xff] }
  0x2c   : > { %253 = vst [vmem:[%s1591_s26 + $0x198] sm:$0xff] %v252_v51  ;;  %255 = vst [vmem:[%s1591_s26 + $0x1a0] sm:$0xff] %v254_v52  ;;  %v262_v56 = vld [vmem:[%s1583_s25 + $0x700] sm:$0xff]  ;;  %v264_v57 = vld [vmem:[%s1583_s25 + $0x708] sm:$0xff] }
  0x2d   : > { %257 = vst [vmem:[%s1591_s26 + $0x1a8] sm:$0xff] %v256_v53  ;;  %259 = vst [vmem:[%s1591_s26 + $0x1b0] sm:$0xff] %v258_v54  ;;  %v266_v58 = vld [vmem:[%s1583_s25 + $0x710] sm:$0xff]  ;;  %v268_v59 = vld [vmem:[%s1583_s25 + $0x718] sm:$0xff] }
  0x2e   : > { %261 = vst [vmem:[%s1591_s26 + $0x1b8] sm:$0xff] %v260_v55  ;;  %263 = vst [vmem:[%s1591_s26 + $0x1c0] sm:$0xff] %v262_v56  ;;  %v270_v60 = vld [vmem:[%s1583_s25 + $0x780] sm:$0xff]  ;;  %v272_v61 = vld [vmem:[%s1583_s25 + $0x788] sm:$0xff] }
  0x2f   : > { %265 = vst [vmem:[%s1591_s26 + $0x1c8] sm:$0xff] %v264_v57  ;;  %267 = vst [vmem:[%s1591_s26 + $0x1d0] sm:$0xff] %v266_v58  ;;  %v274_v62 = vld [vmem:[%s1583_s25 + $0x790] sm:$0xff]  ;;  %v276_v63 = vld [vmem:[%s1583_s25 + $0x798] sm:$0xff] }
  0x30   : > { %269 = vst [vmem:[%s1591_s26 + $0x1d8] sm:$0xff] %v268_v59  ;;  %271 = vst [vmem:[%s1591_s26 + $0x1e0] sm:$0xff] %v270_v60  ;;  %v278_v0 = vld [vmem:[%s1583_s25 + $0x800] sm:$0xff]  ;;  %v280_v1 = vld [vmem:[%s1583_s25 + $0x808] sm:$0xff] }
  0x31   : > { %273 = vst [vmem:[%s1591_s26 + $0x1e8] sm:$0xff] %v272_v61  ;;  %275 = vst [vmem:[%s1591_s26 + $0x1f0] sm:$0xff] %v274_v62  ;;  %v282_v2 = vld [vmem:[%s1583_s25 + $0x810] sm:$0xff]  ;;  %v284_v3 = vld [vmem:[%s1583_s25 + $0x818] sm:$0xff] }
  0x32   : > { %277 = vst [vmem:[%s1591_s26 + $0x1f8] sm:$0xff] %v276_v63  ;;  %279 = vst [vmem:[%s1591_s26 + $0x200] sm:$0xff] %v278_v0  ;;  %v286_v4 = vld [vmem:[%s1583_s25 + $0x880] sm:$0xff]  ;;  %v288_v5 = vld [vmem:[%s1583_s25 + $0x888] sm:$0xff] }
  0x33   : > { %281 = vst [vmem:[%s1591_s26 + $0x208] sm:$0xff] %v280_v1  ;;  %283 = vst [vmem:[%s1591_s26 + $0x210] sm:$0xff] %v282_v2  ;;  %v290_v6 = vld [vmem:[%s1583_s25 + $0x890] sm:$0xff]  ;;  %v292_v7 = vld [vmem:[%s1583_s25 + $0x898] sm:$0xff] }
  0x34   : > { %285 = vst [vmem:[%s1591_s26 + $0x218] sm:$0xff] %v284_v3  ;;  %287 = vst [vmem:[%s1591_s26 + $0x220] sm:$0xff] %v286_v4  ;;  %v294_v8 = vld [vmem:[%s1583_s25 + $0x900] sm:$0xff]  ;;  %v296_v9 = vld [vmem:[%s1583_s25 + $0x908] sm:$0xff] }
  0x35   : > { %289 = vst [vmem:[%s1591_s26 + $0x228] sm:$0xff] %v288_v5  ;;  %291 = vst [vmem:[%s1591_s26 + $0x230] sm:$0xff] %v290_v6  ;;  %v298_v10 = vld [vmem:[%s1583_s25 + $0x910] sm:$0xff]  ;;  %v300_v11 = vld [vmem:[%s1583_s25 + $0x918] sm:$0xff] }
  0x36   : > { %293 = vst [vmem:[%s1591_s26 + $0x238] sm:$0xff] %v292_v7  ;;  %295 = vst [vmem:[%s1591_s26 + $0x240] sm:$0xff] %v294_v8  ;;  %v302_v12 = vld [vmem:[%s1583_s25 + $0x980] sm:$0xff]  ;;  %v304_v13 = vld [vmem:[%s1583_s25 + $0x988] sm:$0xff] }
  0x37   : > { %297 = vst [vmem:[%s1591_s26 + $0x248] sm:$0xff] %v296_v9  ;;  %299 = vst [vmem:[%s1591_s26 + $0x250] sm:$0xff] %v298_v10  ;;  %v306_v14 = vld [vmem:[%s1583_s25 + $0x990] sm:$0xff]  ;;  %v308_v15 = vld [vmem:[%s1583_s25 + $0x998] sm:$0xff] }
  0x38   : > { %301 = vst [vmem:[%s1591_s26 + $0x258] sm:$0xff] %v300_v11  ;;  %303 = vst [vmem:[%s1591_s26 + $0x260] sm:$0xff] %v302_v12  ;;  %v310_v16 = vld [vmem:[%s1583_s25 + $0xa00] sm:$0xff]  ;;  %v312_v17 = vld [vmem:[%s1583_s25 + $0xa08] sm:$0xff] }
  0x39   : > { %305 = vst [vmem:[%s1591_s26 + $0x268] sm:$0xff] %v304_v13  ;;  %307 = vst [vmem:[%s1591_s26 + $0x270] sm:$0xff] %v306_v14  ;;  %v314_v18 = vld [vmem:[%s1583_s25 + $0xa10] sm:$0xff]  ;;  %v316_v19 = vld [vmem:[%s1583_s25 + $0xa18] sm:$0xff] }
  0x3a   : > { %309 = vst [vmem:[%s1591_s26 + $0x278] sm:$0xff] %v308_v15  ;;  %311 = vst [vmem:[%s1591_s26 + $0x280] sm:$0xff] %v310_v16  ;;  %v318_v20 = vld [vmem:[%s1583_s25 + $0xa80] sm:$0xff]  ;;  %v320_v21 = vld [vmem:[%s1583_s25 + $0xa88] sm:$0xff] }
  0x3b   : > { %313 = vst [vmem:[%s1591_s26 + $0x288] sm:$0xff] %v312_v17  ;;  %315 = vst [vmem:[%s1591_s26 + $0x290] sm:$0xff] %v314_v18  ;;  %v322_v22 = vld [vmem:[%s1583_s25 + $0xa90] sm:$0xff]  ;;  %v324_v23 = vld [vmem:[%s1583_s25 + $0xa98] sm:$0xff] }
  0x3c   : > { %317 = vst [vmem:[%s1591_s26 + $0x298] sm:$0xff] %v316_v19  ;;  %319 = vst [vmem:[%s1591_s26 + $0x2a0] sm:$0xff] %v318_v20  ;;  %v326_v24 = vld [vmem:[%s1583_s25 + $0xb00] sm:$0xff]  ;;  %v328_v25 = vld [vmem:[%s1583_s25 + $0xb08] sm:$0xff] }
  0x3d   : > { %321 = vst [vmem:[%s1591_s26 + $0x2a8] sm:$0xff] %v320_v21  ;;  %323 = vst [vmem:[%s1591_s26 + $0x2b0] sm:$0xff] %v322_v22  ;;  %v330_v26 = vld [vmem:[%s1583_s25 + $0xb10] sm:$0xff]  ;;  %v332_v27 = vld [vmem:[%s1583_s25 + $0xb18] sm:$0xff] }
  0x3e   : > { %325 = vst [vmem:[%s1591_s26 + $0x2b8] sm:$0xff] %v324_v23  ;;  %327 = vst [vmem:[%s1591_s26 + $0x2c0] sm:$0xff] %v326_v24  ;;  %v334_v28 = vld [vmem:[%s1583_s25 + $0xb80] sm:$0xff]  ;;  %v336_v29 = vld [vmem:[%s1583_s25 + $0xb88] sm:$0xff] }
  0x3f   : > { %329 = vst [vmem:[%s1591_s26 + $0x2c8] sm:$0xff] %v328_v25  ;;  %331 = vst [vmem:[%s1591_s26 + $0x2d0] sm:$0xff] %v330_v26  ;;  %v338_v30 = vld [vmem:[%s1583_s25 + $0xb90] sm:$0xff]  ;;  %v340_v31 = vld [vmem:[%s1583_s25 + $0xb98] sm:$0xff] }
  0x40   : > { %333 = vst [vmem:[%s1591_s26 + $0x2d8] sm:$0xff] %v332_v27  ;;  %335 = vst [vmem:[%s1591_s26 + $0x2e0] sm:$0xff] %v334_v28  ;;  %v342_v32 = vld [vmem:[%s1583_s25 + $0xc00] sm:$0xff]  ;;  %v344_v33 = vld [vmem:[%s1583_s25 + $0xc08] sm:$0xff] }
  0x41   : > { %337 = vst [vmem:[%s1591_s26 + $0x2e8] sm:$0xff] %v336_v29  ;;  %339 = vst [vmem:[%s1591_s26 + $0x2f0] sm:$0xff] %v338_v30  ;;  %v346_v34 = vld [vmem:[%s1583_s25 + $0xc10] sm:$0xff]  ;;  %v348_v35 = vld [vmem:[%s1583_s25 + $0xc18] sm:$0xff] }
  0x42   : > { %341 = vst [vmem:[%s1591_s26 + $0x2f8] sm:$0xff] %v340_v31  ;;  %343 = vst [vmem:[%s1591_s26 + $0x300] sm:$0xff] %v342_v32  ;;  %v350_v36 = vld [vmem:[%s1583_s25 + $0xc80] sm:$0xff]  ;;  %v352_v37 = vld [vmem:[%s1583_s25 + $0xc88] sm:$0xff] }
  0x43   : > { %345 = vst [vmem:[%s1591_s26 + $0x308] sm:$0xff] %v344_v33  ;;  %347 = vst [vmem:[%s1591_s26 + $0x310] sm:$0xff] %v346_v34  ;;  %v354_v38 = vld [vmem:[%s1583_s25 + $0xc90] sm:$0xff]  ;;  %v356_v39 = vld [vmem:[%s1583_s25 + $0xc98] sm:$0xff] }
  0x44   : > { %349 = vst [vmem:[%s1591_s26 + $0x318] sm:$0xff] %v348_v35  ;;  %351 = vst [vmem:[%s1591_s26 + $0x320] sm:$0xff] %v350_v36  ;;  %v358_v40 = vld [vmem:[%s1583_s25 + $0xd00] sm:$0xff]  ;;  %v360_v41 = vld [vmem:[%s1583_s25 + $0xd08] sm:$0xff] }
  0x45   : > { %353 = vst [vmem:[%s1591_s26 + $0x328] sm:$0xff] %v352_v37  ;;  %355 = vst [vmem:[%s1591_s26 + $0x330] sm:$0xff] %v354_v38  ;;  %v362_v42 = vld [vmem:[%s1583_s25 + $0xd10] sm:$0xff]  ;;  %v364_v43 = vld [vmem:[%s1583_s25 + $0xd18] sm:$0xff] }
  0x46   : > { %357 = vst [vmem:[%s1591_s26 + $0x338] sm:$0xff] %v356_v39  ;;  %359 = vst [vmem:[%s1591_s26 + $0x340] sm:$0xff] %v358_v40 }
  0x47   : > { %361 = vst [vmem:[%s1591_s26 + $0x348] sm:$0xff] %v360_v41  ;;  %363 = vst [vmem:[%s1591_s26 + $0x350] sm:$0xff] %v362_v42 }
  0x48   : > { %365 = vst [vmem:[%s1591_s26 + $0x358] sm:$0xff] %v364_v43 }
  0x49 PF: > { %p1338_p5 = scmp.ge.s32.totalorder %s1526_s14, 1  ;;  %p370_p6 = scmp.lt.s32.totalorder %s1526_s14, 5 }
  0x4b   : > { %p371_p7 = pnand %p1338_p5, %p370_p6 }
  0x4c   : > { %s377_s27 = sand.u32 (!%p371_p7), 1, %s1518_s12   ;;  %v1809_v44 = vld [vmem:[%s1978_s1] sm:$0xff] (!%p371_p7)  ;;  %vm1069_vm0 = vcmask (!%p371_p7), 719872   ;;  %v1528_v47 = vmov (!%p371_p7), 0   ;;  %vm1073_vm1 = vcmask (!%p371_p7), 1043456   ;;  %s1339_s7 = sshll.u32 (!%p371_p7), %s1332_s15, 3 }
  0x4d   : > { %374 = sbr.rel (%p371_p7) target bundleno = 413 (0x19d), region = 51  ;;  %v517_v45 = vld [vmem:[%s1979_s2] sm:$0xff] (!%p371_p7)  ;;  %v1816_v46 = vcombine.high (!%p371_p7), %v1809_v44, %v1809_v44  ;;  %1493 = vset.pattern.permute.xlu0 (!%p371_p7), %v1528_v47  ;;  %p402_p8 = scmp.lt.s32.totalorder (!%p371_p7), %s1339_s7, 31 }
  0x4e   : > { %s1467_s5 = smul.u32 (!%p371_p7), 864, %s377_s27  ;;  %520 = vperm.xlu0 (!%p371_p7), %1493, %v517_v45  }
  0x4f   : > { %1456 = vmatprep.mubr.msk.bf16.mxu0 (!%p371_p7), %vm1069_vm0, %v1816_v46  ;;  %1458 = vmatprep.mubr.msk.bf16.mxu1 (!%p371_p7), %vm1069_vm0, %v1816_v46 }
  0x50   : > { %s1822_s6 = scalar_lea.vmem (!%p371_p7), [#allocation2], %s1467_s5 }
  0x51   : > { %v409_v48 = vld [vmem:[%s1822_s6] sm:$0xff] (!%p371_p7)  ;;  %v410_v50 = vld [vmem:[%s1822_s6 + $0x8] sm:$0xff] (!%p371_p7) }
  0x52   : > { %v413_v49 = vld [vmem:[%s1822_s6 + $0x20] sm:$0xff] (!%p371_p7)  ;;  %v414_v52 = vld [vmem:[%s1822_s6 + $0x28] sm:$0xff] (!%p371_p7) }
  0x53   : > { %v1344_v51 = vcombine.high (!%p371_p7), %v409_v48, %v413_v49  ;;  %v1343_v53 = vcombine.low (!%p371_p7), %v409_v48, %v413_v49  ;;  %v417_v54 = vld [vmem:[%s1822_s6 + $0x40] sm:$0xff] (!%p371_p7)  ;;  %v1346_v56 = vcombine.high (!%p371_p7), %v410_v50, %v414_v52  ;;  %v1345_v57 = vcombine.low (!%p371_p7), %v410_v50, %v414_v52  ;;  %v418_v59 = vld [vmem:[%s1822_s6 + $0x48] sm:$0xff] (!%p371_p7) }
  0x54   : > { %v421_v55 = vld [vmem:[%s1822_s6 + $0x60] sm:$0xff]  ;;  %v422_v60 = vld [vmem:[%s1822_s6 + $0x68] sm:$0xff]  ;;  %s1985_s7 = smov (!%p402_p8, %s1339_s7), 31 }
  0x55   : > { %v1352_v58 = vcombine.high %v417_v54, %v421_v55  ;;  %v425_v61 = vld [vmem:[%s1822_s6 + $0x80] sm:$0xff]  ;;  %1098 = vmatprep.subr.bf16.mxu0 %v1344_v51  ;;  %v1354_v62 = vcombine.high %v418_v59, %v422_v60  ;;  %v426_v0 = vld [vmem:[%s1822_s6 + $0x88] sm:$0xff]  ;;  %1139 = vmatprep.subr.bf16.mxu1 %v1346_v56  ;;  %v1351_v2 = vcombine.low %v417_v54, %v421_v55  ;;  %s1340_s8 = sshll.u32 %s1985_s7, 3 }
  0x56   : > { %v429_v63 = vld [vmem:[%s1822_s6 + $0xa0] sm:$0xff]  ;;  %v430_v1 = vld [vmem:[%s1822_s6 + $0xa8] sm:$0xff]  ;;  %1099 = vmatpush1.bf16.msra.mxu0 %v1343_v53  ;;  %1140 = vmatpush1.bf16.msra.mxu1 %v1345_v57  ;;  %v1353_v3 = vcombine.low %v418_v59, %v422_v60  ;;  %s1957_s11 = scalar_lea.vmem %s1980_s3, %s1340_s8 }
  0x57   : > { %1100 = vmatprep.subr.bf16.mxu0 %v1352_v58  ;;  %v1360_v4 = vcombine.high %v425_v61, %v429_v63  ;;  %1141 = vmatprep.subr.bf16.mxu1 %v1354_v62  ;;  %v1362_v5 = vcombine.high %v426_v0, %v430_v1  ;;  %v433_v6 = vld [vmem:[%s1822_s6 + $0xc0] sm:$0xff]  ;;  %v434_v8 = vld [vmem:[%s1822_s6 + $0xc8] sm:$0xff]  ;;  %v1359_v10 = vcombine.low %v425_v61, %v429_v63 }
  0x58   : > { %v437_v7 = vld [vmem:[%s1822_s6 + $0xe0] sm:$0xff]  ;;  %v438_v9 = vld [vmem:[%s1822_s6 + $0xe8] sm:$0xff]  ;;  %v1361_v11 = vcombine.low %v426_v0, %v430_v1 }
  0x59   : > { %v1368_v12 = vcombine.high %v433_v6, %v437_v7  ;;  %v1370_v13 = vcombine.high %v434_v8, %v438_v9  ;;  %v441_v14 = vld [vmem:[%s1822_s6 + $0x100] sm:$0xff]  ;;  %v442_v16 = vld [vmem:[%s1822_s6 + $0x108] sm:$0xff]  ;;  %v1367_v18 = vcombine.low %v433_v6, %v437_v7  ;;  %v1369_v19 = vcombine.low %v434_v8, %v438_v9 }
  0x5a   : > { %1101 = vmatpush1.bf16.msra.mxu0 %v1351_v2  ;;  %1142 = vmatpush1.bf16.msra.mxu1 %v1353_v3  ;;  %v445_v15 = vld [vmem:[%s1822_s6 + $0x120] sm:$0xff]  ;;  %v446_v17 = vld [vmem:[%s1822_s6 + $0x128] sm:$0xff] }
  0x5b   : > { %1102 = vmatprep.subr.bf16.mxu0 %v1360_v4  ;;  %1143 = vmatprep.subr.bf16.mxu1 %v1362_v5  ;;  %v1376_v20 = vcombine.high %v441_v14, %v445_v15  ;;  %v1378_v21 = vcombine.high %v442_v16, %v446_v17  ;;  %v449_v22 = vld [vmem:[%s1822_s6 + $0x140] sm:$0xff]  ;;  %v450_v24 = vld [vmem:[%s1822_s6 + $0x148] sm:$0xff]  ;;  %v1375_v26 = vcombine.low %v441_v14, %v445_v15 }
  0x5c   : > { %v453_v23 = vld [vmem:[%s1822_s6 + $0x160] sm:$0xff]  ;;  %v454_v25 = vld [vmem:[%s1822_s6 + $0x168] sm:$0xff]  ;;  %v1377_v27 = vcombine.low %v442_v16, %v446_v17 }
  0x5d   : > { %v1384_v28 = vcombine.high %v449_v22, %v453_v23  ;;  %v1386_v29 = vcombine.high %v450_v24, %v454_v25  ;;  %v457_v30 = vld [vmem:[%s1822_s6 + $0x180] sm:$0xff]  ;;  %v458_v32 = vld [vmem:[%s1822_s6 + $0x188] sm:$0xff]  ;;  %v1383_v34 = vcombine.low %v449_v22, %v453_v23  ;;  %v1385_v35 = vcombine.low %v450_v24, %v454_v25 }
  0x5e   : > { %1103 = vmatpush1.bf16.msra.mxu0 %v1359_v10  ;;  %1144 = vmatpush1.bf16.msra.mxu1 %v1361_v11  ;;  %v461_v31 = vld [vmem:[%s1822_s6 + $0x1a0] sm:$0xff]  ;;  %v462_v33 = vld [vmem:[%s1822_s6 + $0x1a8] sm:$0xff] }
  0x5f   : > { %1104 = vmatprep.subr.bf16.mxu0 %v1368_v12  ;;  %1145 = vmatprep.subr.bf16.mxu1 %v1370_v13  ;;  %v1392_v36 = vcombine.high %v457_v30, %v461_v31  ;;  %v1394_v37 = vcombine.high %v458_v32, %v462_v33  ;;  %v465_v38 = vld [vmem:[%s1822_s6 + $0x1c0] sm:$0xff]  ;;  %v466_v40 = vld [vmem:[%s1822_s6 + $0x1c8] sm:$0xff]  ;;  %v1391_v42 = vcombine.low %v457_v30, %v461_v31 }
  0x60   : > { %v469_v39 = vld [vmem:[%s1822_s6 + $0x1e0] sm:$0xff]  ;;  %v470_v41 = vld [vmem:[%s1822_s6 + $0x1e8] sm:$0xff]  ;;  %v1393_v43 = vcombine.low %v458_v32, %v462_v33  ;;  %v411_v32 = vld [vmem:[%s1822_s6 + $0x10] sm:$0xff] }
  0x61   : > { %v1400_v45 = vcombine.high %v465_v38, %v469_v39  ;;  %v1402_v47 = vcombine.high %v466_v40, %v470_v41  ;;  %v473_v48 = vld [vmem:[%s1822_s6 + $0x200] sm:$0xff]  ;;  %v474_v50 = vld [vmem:[%s1822_s6 + $0x208] sm:$0xff]  ;;  %v1399_v52 = vcombine.low %v465_v38, %v469_v39  ;;  %v1401_v53 = vcombine.low %v466_v40, %v470_v41  ;;  %v415_v33 = vld [vmem:[%s1822_s6 + $0x30] sm:$0xff] }
  0x62   : > { %1105 = vmatpush1.bf16.msra.mxu0 %v1367_v18  ;;  %1146 = vmatpush1.bf16.msra.mxu1 %v1369_v19  ;;  %v477_v49 = vld [vmem:[%s1822_s6 + $0x220] sm:$0xff]  ;;  %v478_v51 = vld [vmem:[%s1822_s6 + $0x228] sm:$0xff]  ;;  %v419_v40 = vld [vmem:[%s1822_s6 + $0x50] sm:$0xff] }
  0x63   : > { %1106 = vmatprep.subr.bf16.mxu0 %v1376_v20  ;;  %1147 = vmatprep.subr.bf16.mxu1 %v1378_v21  ;;  %v1408_v54 = vcombine.high %v473_v48, %v477_v49  ;;  %v1410_v55 = vcombine.high %v474_v50, %v478_v51  ;;  %v481_v56 = vld [vmem:[%s1822_s6 + $0x240] sm:$0xff]  ;;  %v482_v58 = vld [vmem:[%s1822_s6 + $0x248] sm:$0xff]  ;;  %v1407_v60 = vcombine.low %v473_v48, %v477_v49  ;;  %v423_v41 = vld [vmem:[%s1822_s6 + $0x70] sm:$0xff] }
  0x64   : > { %v485_v57 = vld [vmem:[%s1822_s6 + $0x260] sm:$0xff]  ;;  %v486_v59 = vld [vmem:[%s1822_s6 + $0x268] sm:$0xff]  ;;  %v1409_v61 = vcombine.low %v474_v50, %v478_v51  ;;  %v1356_v49 = vcombine.high %v419_v40, %v423_v41  ;;  %v427_v51 = vld [vmem:[%s1822_s6 + $0x90] sm:$0xff] }
  0x65   : > { %v1416_v62 = vcombine.high %v481_v56, %v485_v57  ;;  %v1418_v63 = vcombine.high %v482_v58, %v486_v59  ;;  %v489_v0 = vld [vmem:[%s1822_s6 + $0x280] sm:$0xff]  ;;  %v490_v2 = vld [vmem:[%s1822_s6 + $0x288] sm:$0xff]  ;;  %v1415_v4 = vcombine.low %v481_v56, %v485_v57  ;;  %v1417_v5 = vcombine.low %v482_v58, %v486_v59  ;;  %v435_v58 = vld [vmem:[%s1822_s6 + $0xd0] sm:$0xff] }
  0x66   : > { %1107 = vmatpush1.bf16.msra.mxu0 %v1375_v26  ;;  %1148 = vmatpush1.bf16.msra.mxu1 %v1377_v27  ;;  %v493_v1 = vld [vmem:[%s1822_s6 + $0x2a0] sm:$0xff]  ;;  %v494_v3 = vld [vmem:[%s1822_s6 + $0x2a8] sm:$0xff]  ;;  %v439_v59 = vld [vmem:[%s1822_s6 + $0xf0] sm:$0xff] }
  0x67   : > { %1108 = vmatprep.subr.bf16.mxu0 %v1384_v28  ;;  %1149 = vmatprep.subr.bf16.mxu1 %v1386_v29  ;;  %v1424_v6 = vcombine.high %v489_v0, %v493_v1  ;;  %v1426_v7 = vcombine.high %v490_v2, %v494_v3  ;;  %v497_v8 = vld [vmem:[%s1822_s6 + $0x2c0] sm:$0xff]  ;;  %v498_v10 = vld [vmem:[%s1822_s6 + $0x2c8] sm:$0xff]  ;;  %v1423_v12 = vcombine.low %v489_v0, %v493_v1 }
  0x68   : > { %v501_v9 = vld [vmem:[%s1822_s6 + $0x2e0] sm:$0xff]  ;;  %v502_v11 = vld [vmem:[%s1822_s6 + $0x2e8] sm:$0xff]  ;;  %v1425_v13 = vcombine.low %v490_v2, %v494_v3  ;;  %v1372_v0 = vcombine.high %v435_v58, %v439_v59  ;;  %v443_v2 = vld [vmem:[%s1822_s6 + $0x110] sm:$0xff] }
  0x69   : > { %v1432_v14 = vcombine.high %v497_v8, %v501_v9  ;;  %v1434_v15 = vcombine.high %v498_v10, %v502_v11  ;;  %v505_v16 = vld [vmem:[%s1822_s6 + $0x300] sm:$0xff]  ;;  %v506_v18 = vld [vmem:[%s1822_s6 + $0x308] sm:$0xff]  ;;  %v1431_v20 = vcombine.low %v497_v8, %v501_v9  ;;  %v1433_v21 = vcombine.low %v498_v10, %v502_v11  ;;  %v447_v3 = vld [vmem:[%s1822_s6 + $0x130] sm:$0xff] }
  0x6a   : > { %1109 = vmatpush1.bf16.msra.mxu0 %v1383_v34  ;;  %1150 = vmatpush1.bf16.msra.mxu1 %v1385_v35  ;;  %v509_v17 = vld [vmem:[%s1822_s6 + $0x320] sm:$0xff]  ;;  %v510_v19 = vld [vmem:[%s1822_s6 + $0x328] sm:$0xff]  ;;  %v412_v34 = vld [vmem:[%s1822_s6 + $0x18] sm:$0xff] }
  0x6b   : > { %1110 = vmatprep.subr.bf16.mxu0 %v1392_v36  ;;  %1151 = vmatprep.subr.bf16.mxu1 %v1394_v37  ;;  %v1440_v22 = vcombine.high %v505_v16, %v509_v17  ;;  %v1442_v23 = vcombine.high %v506_v18, %v510_v19  ;;  %v513_v24 = vld [vmem:[%s1822_s6 + $0x340] sm:$0xff]  ;;  %v514_v25 = vld [vmem:[%s1822_s6 + $0x348] sm:$0xff]  ;;  %v1439_v26 = vcombine.low %v505_v16, %v509_v17  ;;  %v416_v35 = vld [vmem:[%s1822_s6 + $0x38] sm:$0xff] }
  0x6c   : > { %v1441_v27 = vcombine.low %v506_v18, %v510_v19  ;;  %v1448_v28 = vcombine.high %v513_v24, %v513_v24  ;;  %v1447_v29 = vcombine.low %v513_v24, %v513_v24  ;;  %v1450_v30 = vcombine.high %v514_v25, %v514_v25  ;;  %v451_v9 = vld [vmem:[%s1822_s6 + $0x150] sm:$0xff]  ;;  %v452_v11 = vld [vmem:[%s1822_s6 + $0x158] sm:$0xff] }
  0x6d   : > { %v1449_v31 = vcombine.low %v514_v25, %v514_v25  ;;  %v1348_v37 = vcombine.high %v411_v32, %v415_v33  ;;  %v1350_v39 = vcombine.high %v412_v34, %v416_v35  ;;  %v1349_v48 = vcombine.low %v412_v34, %v416_v35  ;;  %v455_v10 = vld [vmem:[%s1822_s6 + $0x170] sm:$0xff]  ;;  %v460_v19 = vld [vmem:[%s1822_s6 + $0x198] sm:$0xff] }
  0x6e   : > { %1111 = vmatpush1.bf16.msra.mxu0 %v1391_v42  ;;  %1152 = vmatpush1.bf16.msra.mxu1 %v1393_v43  ;;  %v1075_v36 = vsel %vm1073_vm1, %v1447_v29, 0  ;;  %v1890_v42 = vcombine.low %v1809_v44, %v1809_v44  ;;  %v420_v43 = vld [vmem:[%s1822_s6 + $0x58] sm:$0xff]  ;;  %v459_v17 = vld [vmem:[%s1822_s6 + $0x190] sm:$0xff] }
  0x6f   : > { %1112 = vmatprep.subr.bf16.mxu0 %v1400_v45  ;;  %1153 = vmatprep.subr.bf16.mxu1 %v1402_v47  ;;  %v1081_v38 = vsel %vm1073_vm1, %v1449_v31, 0  ;;  %v424_v45 = vld [vmem:[%s1822_s6 + $0x78] sm:$0xff]  ;;  %v1347_v47 = vcombine.low %v411_v32, %v415_v33  ;;  %v463_v18 = vld [vmem:[%s1822_s6 + $0x1b0] sm:$0xff] }
  0x70   : > { %v1358_v50 = vcombine.high %v420_v43, %v424_v45  ;;  %v428_v44 = vld [vmem:[%s1822_s6 + $0x98] sm:$0xff]  ;;  %v467_v25 = vld [vmem:[%s1822_s6 + $0x1d0] sm:$0xff]  ;;  %v1395_v29 = vcombine.low %v459_v17, %v463_v18 }
  0x71   : > { %v475_v33 = vld [vmem:[%s1822_s6 + $0x210] sm:$0xff]  ;;  %v476_v35 = vld [vmem:[%s1822_s6 + $0x218] sm:$0xff] }
  0x72   : > { %1113 = vmatpush1.bf16.msra.mxu0 %v1399_v52  ;;  %1154 = vmatpush1.bf16.msra.mxu1 %v1401_v53  ;;  %v431_v52 = vld [vmem:[%s1822_s6 + $0xb0] sm:$0xff]  ;;  %v432_v53 = vld [vmem:[%s1822_s6 + $0xb8] sm:$0xff] }
  0x73   : > { %1114 = vmatprep.subr.bf16.mxu0 %v1408_v54  ;;  %1155 = vmatprep.subr.bf16.mxu1 %v1410_v55  ;;  %v1355_v54 = vcombine.low %v419_v40, %v423_v41  ;;  %v1357_v55 = vcombine.low %v420_v43, %v424_v45  ;;  %v1364_v56 = vcombine.high %v427_v51, %v431_v52  ;;  %v479_v34 = vld [vmem:[%s1822_s6 + $0x230] sm:$0xff]  ;;  %v484_v45 = vld [vmem:[%s1822_s6 + $0x258] sm:$0xff] }
  0x74   : > { %v1366_v57 = vcombine.high %v428_v44, %v432_v53  ;;  %v483_v41 = vld [vmem:[%s1822_s6 + $0x250] sm:$0xff] }
  0x75   : > { %v487_v43 = vld [vmem:[%s1822_s6 + $0x270] sm:$0xff] }
  0x76   : > { %1115 = vmatpush1.bf16.msra.mxu0 %v1407_v60  ;;  %1156 = vmatpush1.bf16.msra.mxu1 %v1409_v61  ;;  %v436_v60 = vld [vmem:[%s1822_s6 + $0xd8] sm:$0xff] }
  0x77   : > { %1116 = vmatprep.subr.bf16.mxu0 %v1416_v62  ;;  %1157 = vmatprep.subr.bf16.mxu1 %v1418_v63  ;;  %v440_v61 = vld [vmem:[%s1822_s6 + $0xf8] sm:$0xff]  ;;  %v1363_v62 = vcombine.low %v427_v51, %v431_v52  ;;  %v1365_v63 = vcombine.low %v428_v44, %v432_v53  ;;  %v491_v52 = vld [vmem:[%s1822_s6 + $0x290] sm:$0xff] }
  0x78   : > { %v1374_v1 = vcombine.high %v436_v60, %v440_v61  ;;  %v495_v44 = vld [vmem:[%s1822_s6 + $0x2b0] sm:$0xff]  ;;  %v492_v53 = vld [vmem:[%s1822_s6 + $0x298] sm:$0xff] }
  0x7a   : > { %1117 = vmatpush1.bf16.msra.mxu0 %v1415_v4  ;;  %1158 = vmatpush1.bf16.msra.mxu1 %v1417_v5  ;;  %v444_v4 = vld [vmem:[%s1822_s6 + $0x118] sm:$0xff] }
  0x7b   : > { %1118 = vmatprep.subr.bf16.mxu0 %v1424_v6  ;;  %1159 = vmatprep.subr.bf16.mxu1 %v1426_v7  ;;  %v448_v5 = vld [vmem:[%s1822_s6 + $0x138] sm:$0xff]  ;;  %v1371_v6 = vcombine.low %v435_v58, %v439_v59  ;;  %v1380_v7 = vcombine.high %v443_v2, %v447_v3  ;;  %v499_v59 = vld [vmem:[%s1822_s6 + $0x2d0] sm:$0xff] }
  0x7c   : > { %v1382_v8 = vcombine.high %v444_v4, %v448_v5 }
  0x7e   : > { %1119 = vmatpush1.bf16.msra.mxu0 %v1423_v12  ;;  %1160 = vmatpush1.bf16.msra.mxu1 %v1425_v13  ;;  %v456_v12 = vld [vmem:[%s1822_s6 + $0x178] sm:$0xff]  ;;  %v1379_v13 = vcombine.low %v443_v2, %v447_v3  ;;  %v507_v3 = vld [vmem:[%s1822_s6 + $0x310] sm:$0xff] }
  0x7f   : > { %1120 = vmatprep.subr.bf16.mxu0 %v1432_v14  ;;  %1161 = vmatprep.subr.bf16.mxu1 %v1434_v15  ;;  %v1381_v14 = vcombine.low %v444_v4, %v448_v5  ;;  %v1388_v15 = vcombine.high %v451_v9, %v455_v10  ;;  %v1390_v16 = vcombine.high %v452_v11, %v456_v12  ;;  %v511_v4 = vld [vmem:[%s1822_s6 + $0x330] sm:$0xff]  ;;  %v508_v5 = vld [vmem:[%s1822_s6 + $0x318] sm:$0xff] }
  0x82   : > { %1121 = vmatpush1.bf16.msra.mxu0 %v1431_v20  ;;  %1162 = vmatpush1.bf16.msra.mxu1 %v1433_v21  ;;  %v464_v20 = vld [vmem:[%s1822_s6 + $0x1b8] sm:$0xff]  ;;  %v1387_v21 = vcombine.low %v451_v9, %v455_v10  ;;  %v515_v10 = vld [vmem:[%s1822_s6 + $0x350] sm:$0xff] }
  0x83   : > { %1122 = vmatprep.subr.bf16.mxu0 %v1440_v22  ;;  %1163 = vmatprep.subr.bf16.mxu1 %v1442_v23  ;;  %v1389_v22 = vcombine.low %v452_v11, %v456_v12  ;;  %v1396_v23 = vcombine.high %v459_v17, %v463_v18  ;;  %v1398_v24 = vcombine.high %v460_v19, %v464_v20  ;;  %v516_v11 = vld [vmem:[%s1822_s6 + $0x358] sm:$0xff] }
  0x84   : > { %v1443_v12 = vcombine.low %v507_v3, %v511_v4  ;;  %v1453_v17 = vcombine.low %v516_v11, %v516_v11 }
  0x86   : > { %1123 = vmatpush1.bf16.msra.mxu0 %v1439_v26  ;;  %1164 = vmatpush1.bf16.msra.mxu1 %v1441_v27  ;;  %v471_v26 = vld [vmem:[%s1822_s6 + $0x1f0] sm:$0xff]  ;;  %v468_v27 = vld [vmem:[%s1822_s6 + $0x1d8] sm:$0xff] }
  0x87   : > { %1455 = vmatprep.subr.msk.bf16.mxu0 %vm1073_vm1, %v1448_v28  ;;  %1457 = vmatprep.subr.msk.bf16.mxu1 %vm1073_vm1, %v1450_v30  ;;  %v472_v28 = vld [vmem:[%s1822_s6 + $0x1f8] sm:$0xff]  ;;  %v1397_v30 = vcombine.low %v460_v19, %v464_v20  ;;  %v1404_v31 = vcombine.high %v467_v25, %v471_v26  ;;  %v1093_v19 = vsel %vm1073_vm1, %v1453_v17, 0 }
  0x88   : > { %v1406_v32 = vcombine.high %v468_v27, %v472_v28 }
  0x8a   : > { %1125 = vmatpush1.bf16.msra.mxu0 %v1075_v36  ;;  %1166 = vmatpush1.bf16.msra.mxu1 %v1081_v38  ;;  %v480_v36 = vld [vmem:[%s1822_s6 + $0x238] sm:$0xff]  ;;  %v1405_v38 = vcombine.low %v468_v27, %v472_v28 }
  0x8b   : > { %1180 = vmatprep.subr.bf16.mxu0 %v1348_v37  ;;  %1221 = vmatprep.subr.bf16.mxu1 %v1350_v39  ;;  %v1403_v37 = vcombine.low %v467_v25, %v471_v26  ;;  %v1412_v39 = vcombine.high %v475_v33, %v479_v34  ;;  %v1414_v40 = vcombine.high %v476_v35, %v480_v36 }
  0x8d   : > { %1131 = vmatmul.mubr.bf16.vlgmr.msra.gmra.mrb[0].mxu0 %v1890_v42  ;;  %1172 = vmatmul.mubr.bf16.vlgmr.msra.gmra.mrb[0].mxu1 %v1890_v42 }
  0x8e   : > { %1181 = vmatpush1.bf16.msra.mxu0 %v1347_v47  ;;  %1222 = vmatpush1.bf16.msra.mxu1 %v1349_v48  ;;  %v488_v47 = vld [vmem:[%s1822_s6 + $0x278] sm:$0xff]  ;;  %v1411_v48 = vcombine.low %v475_v33, %v479_v34 }
  0x8f   : > { %1182 = vmatprep.subr.bf16.mxu0 %v1356_v49  ;;  %1223 = vmatprep.subr.bf16.mxu1 %v1358_v50  ;;  %v1413_v49 = vcombine.low %v476_v35, %v480_v36  ;;  %v1420_v50 = vcombine.high %v483_v41, %v487_v43  ;;  %v1422_v51 = vcombine.high %v484_v45, %v488_v47 }
  0x90   : > { %1460 = vmatprep.mubr.msk.bf16.mxu0 %vm1069_vm0, %v1816_v46  ;;  %1462 = vmatprep.mubr.msk.bf16.mxu1 %vm1069_vm0, %v1816_v46  ;;  %v1373_v46 = vcombine.low %v436_v60, %v440_v61  ;;  %v503_v60 = vld [vmem:[%s1822_s6 + $0x2f0] sm:$0xff]  ;;  %v500_v61 = vld [vmem:[%s1822_s6 + $0x2d8] sm:$0xff] }
  0x92   : > { %1183 = vmatpush1.bf16.msra.mxu0 %v1355_v54  ;;  %1224 = vmatpush1.bf16.msra.mxu1 %v1357_v55  ;;  %v496_v54 = vld [vmem:[%s1822_s6 + $0x2b8] sm:$0xff]  ;;  %v1419_v55 = vcombine.low %v483_v41, %v487_v43 }
  0x93   : > { %1184 = vmatprep.subr.bf16.mxu0 %v1364_v56  ;;  %1225 = vmatprep.subr.bf16.mxu1 %v1366_v57  ;;  %v1421_v56 = vcombine.low %v484_v45, %v488_v47  ;;  %v1428_v57 = vcombine.high %v491_v52, %v495_v44  ;;  %v1430_v58 = vcombine.high %v492_v53, %v496_v54 }
  0x96   : > { %1185 = vmatpush1.bf16.msra.mxu0 %v1363_v62  ;;  %1226 = vmatpush1.bf16.msra.mxu1 %v1365_v63  ;;  %v504_v62 = vld [vmem:[%s1822_s6 + $0x2f8] sm:$0xff]  ;;  %v1427_v63 = vcombine.low %v491_v52, %v495_v44 }
  0x97   : > { %1186 = vmatprep.subr.bf16.mxu0 %v1372_v0  ;;  %1227 = vmatprep.subr.bf16.mxu1 %v1374_v1  ;;  %v1429_v0 = vcombine.low %v492_v53, %v496_v54  ;;  %v1436_v1 = vcombine.high %v499_v59, %v503_v60  ;;  %v1438_v2 = vcombine.high %v500_v61, %v504_v62 }
  0x9a   : > { %1187 = vmatpush1.bf16.msra.mxu0 %v1371_v6  ;;  %1228 = vmatpush1.bf16.msra.mxu1 %v1373_v46  ;;  %v512_v6 = vld [vmem:[%s1822_s6 + $0x338] sm:$0xff]  ;;  %v1435_v46 = vcombine.low %v499_v59, %v503_v60 }
  0x9b   : > { %1188 = vmatprep.subr.bf16.mxu0 %v1380_v7  ;;  %1229 = vmatprep.subr.bf16.mxu1 %v1382_v8  ;;  %v1437_v7 = vcombine.low %v500_v61, %v504_v62  ;;  %v1444_v8 = vcombine.high %v507_v3, %v511_v4  ;;  %v1446_v9 = vcombine.high %v508_v5, %v512_v6 }
  0x9e   : > { %1189 = vmatpush1.bf16.msra.mxu0 %v1379_v13  ;;  %1230 = vmatpush1.bf16.msra.mxu1 %v1381_v14  ;;  %v1445_v13 = vcombine.low %v508_v5, %v512_v6  ;;  %v1452_v14 = vcombine.high %v515_v10, %v515_v10 }
  0x9f   : > { %1190 = vmatprep.subr.bf16.mxu0 %v1388_v15  ;;  %1231 = vmatprep.subr.bf16.mxu1 %v1390_v16  ;;  %v1451_v15 = vcombine.low %v515_v10, %v515_v10  ;;  %v1454_v16 = vcombine.high %v516_v11, %v516_v11 }
  0xa1   : > { %v1087_v18 = vsel %vm1073_vm1, %v1451_v15, 0 }
  0xa2   : > { %1191 = vmatpush1.bf16.msra.mxu0 %v1387_v21  ;;  %1232 = vmatpush1.bf16.msra.mxu1 %v1389_v22 }
  0xa3   : > { %1192 = vmatprep.subr.bf16.mxu0 %v1396_v23  ;;  %1233 = vmatprep.subr.bf16.mxu1 %v1398_v24 }
  0xa6   : > { %1193 = vmatpush1.bf16.msra.mxu0 %v1395_v29  ;;  %1234 = vmatpush1.bf16.msra.mxu1 %v1397_v30 }
  0xa7   : > { %1194 = vmatprep.subr.bf16.mxu0 %v1404_v31  ;;  %1235 = vmatprep.subr.bf16.mxu1 %v1406_v32 }
  0xaa   : > { %1195 = vmatpush1.bf16.msra.mxu0 %v1403_v37  ;;  %1236 = vmatpush1.bf16.msra.mxu1 %v1405_v38 }
  0xab   : > { %1196 = vmatprep.subr.bf16.mxu0 %v1412_v39  ;;  %1237 = vmatprep.subr.bf16.mxu1 %v1414_v40 }
  0xae   : > { %1197 = vmatpush1.bf16.msra.mxu0 %v1411_v48  ;;  %1238 = vmatpush1.bf16.msra.mxu1 %v1413_v49 }
  0xaf   : > { %1198 = vmatprep.subr.bf16.mxu0 %v1420_v50  ;;  %1239 = vmatprep.subr.bf16.mxu1 %v1422_v51 }
  0xb2   : > { %1199 = vmatpush1.bf16.msra.mxu0 %v1419_v55  ;;  %1240 = vmatpush1.bf16.msra.mxu1 %v1421_v56 }
  0xb3   : > { %1200 = vmatprep.subr.bf16.mxu0 %v1428_v57  ;;  %1241 = vmatprep.subr.bf16.mxu1 %v1430_v58 }
  0xb6   : > { %1201 = vmatpush1.bf16.msra.mxu0 %v1427_v63  ;;  %1242 = vmatpush1.bf16.msra.mxu1 %v1429_v0 }
  0xb7   : > { %1202 = vmatprep.subr.bf16.mxu0 %v1436_v1  ;;  %1243 = vmatprep.subr.bf16.mxu1 %v1438_v2 }
  0xba   : > { %1203 = vmatpush1.bf16.msra.mxu0 %v1435_v46  ;;  %1244 = vmatpush1.bf16.msra.mxu1 %v1437_v7 }
  0xbb   : > { %1204 = vmatprep.subr.bf16.mxu0 %v1444_v8  ;;  %1245 = vmatprep.subr.bf16.mxu1 %v1446_v9 }
  0xbe   : > { %1205 = vmatpush1.bf16.msra.mxu0 %v1443_v12  ;;  %1246 = vmatpush1.bf16.msra.mxu1 %v1445_v13 }
  0xbf   : > { %1459 = vmatprep.subr.msk.bf16.mxu0 %vm1073_vm1, %v1452_v14  ;;  %1461 = vmatprep.subr.msk.bf16.mxu1 %vm1073_vm1, %v1454_v16 }
  0xc2   : > { %1207 = vmatpush1.bf16.msra.mxu0 %v1087_v18  ;;  %1248 = vmatpush1.bf16.msra.mxu1 %v1093_v19 }
  0xc5   : > { %1213 = vmatmul.mubr.bf16.vlgmr.msra.gmra.mrb[4].mxu0 %v1890_v42  ;;  %1254 = vmatmul.mubr.bf16.vlgmr.msra.gmra.mrb[4].mxu1 %v1890_v42 }
  0xcd   : > { %v521_v20 = vpop.permute.xlu0 %520 }
 0x160   : > { %v1132_v21 = vpop.f32.mrb[0].mxu0  ;;  %v1173_v22 = vpop.f32.mrb[0].mxu1 }
 0x161   : > { %v1133_v23 = vadd.f32 %v1132_v21, %v521_v20  ;;  %v1134_v24 = vpop.f32.mrb[1].mxu0  ;;  %v1174_v42 = vadd.f32 %v1173_v22, %v521_v20  ;;  %v1175_v26 = vpop.f32.mrb[1].mxu1 }
 0x162   : > { %v1135_v25 = vadd.f32 %v1134_v24, %v521_v20  ;;  %v1136_v27 = vpop.f32.mrb[2].mxu0  ;;  %v1176_v28 = vadd.f32 %v1175_v26, %v521_v20  ;;  %v1177_v29 = vpop.f32.mrb[2].mxu1 }
 0x163   : > { %1262 = vst [vmem:[%s1957_s11] sm:$0xff] %v1133_v23  ;;  %v1137_v30 = vpop.f32.mrb[3].mxu0  ;;  %1264 = vst [vmem:[%s1957_s11 + $0x10] sm:$0xff] %v1174_v42  ;;  %v1178_v31 = vpop.f32.mrb[3].mxu1 }
 0x164   : > { %1263 = vst [vmem:[%s1957_s11 + $0x8] sm:$0xff] %v1135_v25  ;;  %1265 = vst [vmem:[%s1957_s11 + $0x18] sm:$0xff] %v1176_v28 }
 0x198   : > { %v1214_v32 = vpop.f32.mrb[4].mxu0  ;;  %v1255_v34 = vpop.f32.mrb[4].mxu1 }
 0x199   : > { %v1215_v33 = vadd.f32 %v1214_v32, %v521_v20  ;;  %v1216_v35 = vpop.f32.mrb[5].mxu0  ;;  %v1256_v36 = vadd.f32 %v1255_v34, %v521_v20  ;;  %v1257_v38 = vpop.f32.mrb[5].mxu1 }
 0x19a   : > { %v1217_v37 = vadd.f32 %v1216_v35, %v521_v20  ;;  %v1218_v39 = vpop.f32.mrb[6].mxu0  ;;  %v1258_v40 = vadd.f32 %v1257_v38, %v521_v20  ;;  %v1259_v41 = vpop.f32.mrb[6].mxu1 }
 0x19b   : > { %1266 = vst [vmem:[%s1957_s11 + $0x20] sm:$0xff] %v1215_v33  ;;  %v1219_v43 = vpop.f32.mrb[7].mxu0  ;;  %1268 = vst [vmem:[%s1957_s11 + $0x30] sm:$0xff] %v1256_v36  ;;  %v1260_v45 = vpop.f32.mrb[7].mxu1 }
 0x19c   : > { %1267 = vst [vmem:[%s1957_s11 + $0x28] sm:$0xff] %v1217_v37  ;;  %1269 = vst [vmem:[%s1957_s11 + $0x38] sm:$0xff] %v1258_v40 }
 0x19d PF: > { %p10_p9 = scmp.ge.s32.totalorder %s1566_s16, 6   ;;  %s1981_s12 = smov %s1522_s13 }
 0x19e   : > { %s1982_s13 = smov %s1575_s19  ;;  %s1983_s14 = smov %s1566_s16 }
 0x19f   :  { %12 = sbr.rel (!%p10_p9) target bundleno = 2 (0x2), region = 90 }

// kernel: _lambda_.9
= control target key start
LH: loop header
LB: loop body
LE: loop exit
PB: predicated region body
PF: predicated region fallthrough
CT: control target
= control target key end

     0   :  { %s1562_s12 = smov 0   ;;  %s1564_s13 = smov 0   ;;  %s1976_s0 = inlined_call_operand.vmem [shape: bf16[216,3072], index: 0, kind: input, shape index: {}]   ;;  %s1977_s1 = inlined_call_operand.vmem [shape: bf16[4,216], index: 1, kind: input, shape index: {}]   ;;  %s1978_s2 = inlined_call_operand.vmem [shape: f32[4,1], index: 2, kind: input, shape index: {}]   ;;  %s1979_s3 = inlined_call_operand.vmem [shape: f32[4,3072], index: 3, kind: output, shape index: {}]  }
   0x1   :  { %s1566_s14 = smov 0  }
   0x2 LB: > { %s1348_s15 = sadd.s32 4294967295, %s1539_s14   ;;  %s1579_s16 = sadd.s32 1, %s1539_s14   ;;  %s1539_s14 = sphi %s1566_s14, %s1982_s14   ;;  %s1535_s13 = sphi %s1564_s13, %s1981_s13   ;;  %s1531_s12 = sphi %s1562_s12, %s1980_s12  }
   0x3   : > { %s17_s17 = ssub.s32 %s1539_s14, %s1579_s16  ;;  %s20_s18 = sadd.s32 1, %s1535_s13 }
   0x4   : > { %p18_p0 = scmp.eq.s32.totalorder %s17_s17, 0  ;;  %p27_p1 = scmp.ne.s32.totalorder %s1535_s13, %s1531_s12 }
   0x5   : > { %p28_p2 = scmp.eq.s32.totalorder %s1539_s14, 0  ;;  %p1351_p4 = scmp.ge.s32.totalorder %s1539_s14, 3 }
   0x6   : > { %s1588_s19 = scalar_select %p18_p0, %s1535_s13, %s20_s18  }
   0x7   : > { %p29_p3 = por %p28_p2, %p27_p1  ;;  %127 = sbr.rel (%p1351_p4) target bundleno = 73 (0x49), region = 24 }
   0xe   : > { %130 = sbr.rel (!%p29_p3) target bundleno = 73 (0x49), region = 28  ;;  %s132_s20 = sand.u32 (%p29_p3), 1, %s1535_s13  }
   0xf   : > { %s1480_s21 = sshll.u32 (%p29_p3), %s1539_s14, 5  ;;  %s1481_s22 = smul.u32 (%p29_p3), 864, %s132_s20 }
  0x10   : > { %s1596_s25 = scalar_lea.vmem (%p29_p3), %s1976_s0, %s1480_s21 }
  0x11   : > { %v150_v0 = vld [vmem:[%s1596_s25] sm:$0xff] (%p29_p3)  ;;  %v152_v1 = vld [vmem:[%s1596_s25 + $0x8] sm:$0xff] (%p29_p3)  ;;  %v154_v2 = vld [vmem:[%s1596_s25 + $0x10] sm:$0xff] (%p29_p3)  ;;  %s1604_s26 = scalar_lea.vmem (%p29_p3), [#allocation2], %s1481_s22 }
  0x12   : > { %v156_v3 = vld [vmem:[%s1596_s25 + $0x18] sm:$0xff] (%p29_p3)  ;;  %v158_v4 = vld [vmem:[%s1596_s25 + $0x60] sm:$0xff] (%p29_p3)  ;;  %v160_v5 = vld [vmem:[%s1596_s25 + $0x68] sm:$0xff] (%p29_p3)  ;;  %151 = vst [vmem:[%s1604_s26] sm:$0xff] (%p29_p3), %v150_v0 }
  0x13   : > { %153 = vst [vmem:[%s1604_s26 + $0x8] sm:$0xff] (%p29_p3), %v152_v1  ;;  %155 = vst [vmem:[%s1604_s26 + $0x10] sm:$0xff] (%p29_p3), %v154_v2  ;;  %v162_v6 = vld [vmem:[%s1596_s25 + $0x70] sm:$0xff] (%p29_p3)  ;;  %v164_v7 = vld [vmem:[%s1596_s25 + $0x78] sm:$0xff] (%p29_p3) }
  0x14   : > { %157 = vst [vmem:[%s1604_s26 + $0x18] sm:$0xff] (%p29_p3), %v156_v3  ;;  %159 = vst [vmem:[%s1604_s26 + $0x20] sm:$0xff] (%p29_p3), %v158_v4  ;;  %v166_v8 = vld [vmem:[%s1596_s25 + $0xc0] sm:$0xff] (%p29_p3)  ;;  %v168_v9 = vld [vmem:[%s1596_s25 + $0xc8] sm:$0xff] (%p29_p3) }
  0x15   : > { %161 = vst [vmem:[%s1604_s26 + $0x28] sm:$0xff] %v160_v5  ;;  %163 = vst [vmem:[%s1604_s26 + $0x30] sm:$0xff] %v162_v6  ;;  %v170_v10 = vld [vmem:[%s1596_s25 + $0xd0] sm:$0xff]  ;;  %v172_v11 = vld [vmem:[%s1596_s25 + $0xd8] sm:$0xff] }
  0x16   : > { %165 = vst [vmem:[%s1604_s26 + $0x38] sm:$0xff] %v164_v7  ;;  %167 = vst [vmem:[%s1604_s26 + $0x40] sm:$0xff] %v166_v8  ;;  %v174_v12 = vld [vmem:[%s1596_s25 + $0x120] sm:$0xff]  ;;  %v176_v13 = vld [vmem:[%s1596_s25 + $0x128] sm:$0xff] }
  0x17   : > { %169 = vst [vmem:[%s1604_s26 + $0x48] sm:$0xff] %v168_v9  ;;  %171 = vst [vmem:[%s1604_s26 + $0x50] sm:$0xff] %v170_v10  ;;  %v178_v14 = vld [vmem:[%s1596_s25 + $0x130] sm:$0xff]  ;;  %v180_v15 = vld [vmem:[%s1596_s25 + $0x138] sm:$0xff] }
  0x18   : > { %173 = vst [vmem:[%s1604_s26 + $0x58] sm:$0xff] %v172_v11  ;;  %175 = vst [vmem:[%s1604_s26 + $0x60] sm:$0xff] %v174_v12  ;;  %v182_v16 = vld [vmem:[%s1596_s25 + $0x180] sm:$0xff]  ;;  %v184_v17 = vld [vmem:[%s1596_s25 + $0x188] sm:$0xff] }
  0x19   : > { %177 = vst [vmem:[%s1604_s26 + $0x68] sm:$0xff] %v176_v13  ;;  %179 = vst [vmem:[%s1604_s26 + $0x70] sm:$0xff] %v178_v14  ;;  %v186_v18 = vld [vmem:[%s1596_s25 + $0x190] sm:$0xff]  ;;  %v188_v19 = vld [vmem:[%s1596_s25 + $0x198] sm:$0xff] }
  0x1a   : > { %181 = vst [vmem:[%s1604_s26 + $0x78] sm:$0xff] %v180_v15  ;;  %183 = vst [vmem:[%s1604_s26 + $0x80] sm:$0xff] %v182_v16  ;;  %v190_v20 = vld [vmem:[%s1596_s25 + $0x1e0] sm:$0xff]  ;;  %v192_v21 = vld [vmem:[%s1596_s25 + $0x1e8] sm:$0xff] }
  0x1b   : > { %185 = vst [vmem:[%s1604_s26 + $0x88] sm:$0xff] %v184_v17  ;;  %187 = vst [vmem:[%s1604_s26 + $0x90] sm:$0xff] %v186_v18  ;;  %v194_v22 = vld [vmem:[%s1596_s25 + $0x1f0] sm:$0xff]  ;;  %v196_v23 = vld [vmem:[%s1596_s25 + $0x1f8] sm:$0xff] }
  0x1c   : > { %189 = vst [vmem:[%s1604_s26 + $0x98] sm:$0xff] %v188_v19  ;;  %191 = vst [vmem:[%s1604_s26 + $0xa0] sm:$0xff] %v190_v20  ;;  %v198_v24 = vld [vmem:[%s1596_s25 + $0x240] sm:$0xff]  ;;  %v200_v25 = vld [vmem:[%s1596_s25 + $0x248] sm:$0xff] }
  0x1d   : > { %193 = vst [vmem:[%s1604_s26 + $0xa8] sm:$0xff] %v192_v21  ;;  %195 = vst [vmem:[%s1604_s26 + $0xb0] sm:$0xff] %v194_v22  ;;  %v202_v26 = vld [vmem:[%s1596_s25 + $0x250] sm:$0xff]  ;;  %v204_v27 = vld [vmem:[%s1596_s25 + $0x258] sm:$0xff] }
  0x1e   : > { %197 = vst [vmem:[%s1604_s26 + $0xb8] sm:$0xff] %v196_v23  ;;  %199 = vst [vmem:[%s1604_s26 + $0xc0] sm:$0xff] %v198_v24  ;;  %v206_v28 = vld [vmem:[%s1596_s25 + $0x2a0] sm:$0xff]  ;;  %v208_v29 = vld [vmem:[%s1596_s25 + $0x2a8] sm:$0xff] }
  0x1f   : > { %201 = vst [vmem:[%s1604_s26 + $0xc8] sm:$0xff] %v200_v25  ;;  %203 = vst [vmem:[%s1604_s26 + $0xd0] sm:$0xff] %v202_v26  ;;  %v210_v30 = vld [vmem:[%s1596_s25 + $0x2b0] sm:$0xff]  ;;  %v212_v31 = vld [vmem:[%s1596_s25 + $0x2b8] sm:$0xff] }
  0x20   : > { %205 = vst [vmem:[%s1604_s26 + $0xd8] sm:$0xff] %v204_v27  ;;  %207 = vst [vmem:[%s1604_s26 + $0xe0] sm:$0xff] %v206_v28  ;;  %v214_v32 = vld [vmem:[%s1596_s25 + $0x300] sm:$0xff]  ;;  %v216_v33 = vld [vmem:[%s1596_s25 + $0x308] sm:$0xff] }
  0x21   : > { %209 = vst [vmem:[%s1604_s26 + $0xe8] sm:$0xff] %v208_v29  ;;  %211 = vst [vmem:[%s1604_s26 + $0xf0] sm:$0xff] %v210_v30  ;;  %v218_v34 = vld [vmem:[%s1596_s25 + $0x310] sm:$0xff]  ;;  %v220_v35 = vld [vmem:[%s1596_s25 + $0x318] sm:$0xff] }
  0x22   : > { %213 = vst [vmem:[%s1604_s26 + $0xf8] sm:$0xff] %v212_v31  ;;  %215 = vst [vmem:[%s1604_s26 + $0x100] sm:$0xff] %v214_v32  ;;  %v222_v36 = vld [vmem:[%s1596_s25 + $0x360] sm:$0xff]  ;;  %v224_v37 = vld [vmem:[%s1596_s25 + $0x368] sm:$0xff] }
  0x23   : > { %217 = vst [vmem:[%s1604_s26 + $0x108] sm:$0xff] %v216_v33  ;;  %219 = vst [vmem:[%s1604_s26 + $0x110] sm:$0xff] %v218_v34  ;;  %v226_v38 = vld [vmem:[%s1596_s25 + $0x370] sm:$0xff]  ;;  %v228_v39 = vld [vmem:[%s1596_s25 + $0x378] sm:$0xff] }
  0x24   : > { %221 = vst [vmem:[%s1604_s26 + $0x118] sm:$0xff] %v220_v35  ;;  %223 = vst [vmem:[%s1604_s26 + $0x120] sm:$0xff] %v222_v36  ;;  %v230_v40 = vld [vmem:[%s1596_s25 + $0x3c0] sm:$0xff]  ;;  %v232_v41 = vld [vmem:[%s1596_s25 + $0x3c8] sm:$0xff] }
  0x25   : > { %225 = vst [vmem:[%s1604_s26 + $0x128] sm:$0xff] %v224_v37  ;;  %227 = vst [vmem:[%s1604_s26 + $0x130] sm:$0xff] %v226_v38  ;;  %v234_v42 = vld [vmem:[%s1596_s25 + $0x3d0] sm:$0xff]  ;;  %v236_v43 = vld [vmem:[%s1596_s25 + $0x3d8] sm:$0xff] }
  0x26   : > { %229 = vst [vmem:[%s1604_s26 + $0x138] sm:$0xff] %v228_v39  ;;  %231 = vst [vmem:[%s1604_s26 + $0x140] sm:$0xff] %v230_v40  ;;  %v238_v44 = vld [vmem:[%s1596_s25 + $0x420] sm:$0xff]  ;;  %v240_v45 = vld [vmem:[%s1596_s25 + $0x428] sm:$0xff] }
  0x27   : > { %233 = vst [vmem:[%s1604_s26 + $0x148] sm:$0xff] %v232_v41  ;;  %235 = vst [vmem:[%s1604_s26 + $0x150] sm:$0xff] %v234_v42  ;;  %v242_v46 = vld [vmem:[%s1596_s25 + $0x430] sm:$0xff]  ;;  %v244_v47 = vld [vmem:[%s1596_s25 + $0x438] sm:$0xff] }
  0x28   : > { %237 = vst [vmem:[%s1604_s26 + $0x158] sm:$0xff] %v236_v43  ;;  %239 = vst [vmem:[%s1604_s26 + $0x160] sm:$0xff] %v238_v44  ;;  %v246_v48 = vld [vmem:[%s1596_s25 + $0x480] sm:$0xff]  ;;  %v248_v49 = vld [vmem:[%s1596_s25 + $0x488] sm:$0xff] }
  0x29   : > { %241 = vst [vmem:[%s1604_s26 + $0x168] sm:$0xff] %v240_v45  ;;  %243 = vst [vmem:[%s1604_s26 + $0x170] sm:$0xff] %v242_v46  ;;  %v250_v50 = vld [vmem:[%s1596_s25 + $0x490] sm:$0xff]  ;;  %v252_v51 = vld [vmem:[%s1596_s25 + $0x498] sm:$0xff] }
  0x2a   : > { %245 = vst [vmem:[%s1604_s26 + $0x178] sm:$0xff] %v244_v47  ;;  %247 = vst [vmem:[%s1604_s26 + $0x180] sm:$0xff] %v246_v48  ;;  %v254_v52 = vld [vmem:[%s1596_s25 + $0x4e0] sm:$0xff]  ;;  %v256_v53 = vld [vmem:[%s1596_s25 + $0x4e8] sm:$0xff] }
  0x2b   : > { %249 = vst [vmem:[%s1604_s26 + $0x188] sm:$0xff] %v248_v49  ;;  %251 = vst [vmem:[%s1604_s26 + $0x190] sm:$0xff] %v250_v50  ;;  %v258_v54 = vld [vmem:[%s1596_s25 + $0x4f0] sm:$0xff]  ;;  %v260_v55 = vld [vmem:[%s1596_s25 + $0x4f8] sm:$0xff] }
  0x2c   : > { %253 = vst [vmem:[%s1604_s26 + $0x198] sm:$0xff] %v252_v51  ;;  %255 = vst [vmem:[%s1604_s26 + $0x1a0] sm:$0xff] %v254_v52  ;;  %v262_v56 = vld [vmem:[%s1596_s25 + $0x540] sm:$0xff]  ;;  %v264_v57 = vld [vmem:[%s1596_s25 + $0x548] sm:$0xff] }
  0x2d   : > { %257 = vst [vmem:[%s1604_s26 + $0x1a8] sm:$0xff] %v256_v53  ;;  %259 = vst [vmem:[%s1604_s26 + $0x1b0] sm:$0xff] %v258_v54  ;;  %v266_v58 = vld [vmem:[%s1596_s25 + $0x550] sm:$0xff]  ;;  %v268_v59 = vld [vmem:[%s1596_s25 + $0x558] sm:$0xff] }
  0x2e   : > { %261 = vst [vmem:[%s1604_s26 + $0x1b8] sm:$0xff] %v260_v55  ;;  %263 = vst [vmem:[%s1604_s26 + $0x1c0] sm:$0xff] %v262_v56  ;;  %v270_v60 = vld [vmem:[%s1596_s25 + $0x5a0] sm:$0xff]  ;;  %v272_v61 = vld [vmem:[%s1596_s25 + $0x5a8] sm:$0xff] }
  0x2f   : > { %265 = vst [vmem:[%s1604_s26 + $0x1c8] sm:$0xff] %v264_v57  ;;  %267 = vst [vmem:[%s1604_s26 + $0x1d0] sm:$0xff] %v266_v58  ;;  %v274_v62 = vld [vmem:[%s1596_s25 + $0x5b0] sm:$0xff]  ;;  %v276_v63 = vld [vmem:[%s1596_s25 + $0x5b8] sm:$0xff] }
  0x30   : > { %269 = vst [vmem:[%s1604_s26 + $0x1d8] sm:$0xff] %v268_v59  ;;  %271 = vst [vmem:[%s1604_s26 + $0x1e0] sm:$0xff] %v270_v60  ;;  %v278_v0 = vld [vmem:[%s1596_s25 + $0x600] sm:$0xff]  ;;  %v280_v1 = vld [vmem:[%s1596_s25 + $0x608] sm:$0xff] }
  0x31   : > { %273 = vst [vmem:[%s1604_s26 + $0x1e8] sm:$0xff] %v272_v61  ;;  %275 = vst [vmem:[%s1604_s26 + $0x1f0] sm:$0xff] %v274_v62  ;;  %v282_v2 = vld [vmem:[%s1596_s25 + $0x610] sm:$0xff]  ;;  %v284_v3 = vld [vmem:[%s1596_s25 + $0x618] sm:$0xff] }
  0x32   : > { %277 = vst [vmem:[%s1604_s26 + $0x1f8] sm:$0xff] %v276_v63  ;;  %279 = vst [vmem:[%s1604_s26 + $0x200] sm:$0xff] %v278_v0  ;;  %v286_v4 = vld [vmem:[%s1596_s25 + $0x660] sm:$0xff]  ;;  %v288_v5 = vld [vmem:[%s1596_s25 + $0x668] sm:$0xff] }
  0x33   : > { %281 = vst [vmem:[%s1604_s26 + $0x208] sm:$0xff] %v280_v1  ;;  %283 = vst [vmem:[%s1604_s26 + $0x210] sm:$0xff] %v282_v2  ;;  %v290_v6 = vld [vmem:[%s1596_s25 + $0x670] sm:$0xff]  ;;  %v292_v7 = vld [vmem:[%s1596_s25 + $0x678] sm:$0xff] }
  0x34   : > { %285 = vst [vmem:[%s1604_s26 + $0x218] sm:$0xff] %v284_v3  ;;  %287 = vst [vmem:[%s1604_s26 + $0x220] sm:$0xff] %v286_v4  ;;  %v294_v8 = vld [vmem:[%s1596_s25 + $0x6c0] sm:$0xff]  ;;  %v296_v9 = vld [vmem:[%s1596_s25 + $0x6c8] sm:$0xff] }
  0x35   : > { %289 = vst [vmem:[%s1604_s26 + $0x228] sm:$0xff] %v288_v5  ;;  %291 = vst [vmem:[%s1604_s26 + $0x230] sm:$0xff] %v290_v6  ;;  %v298_v10 = vld [vmem:[%s1596_s25 + $0x6d0] sm:$0xff]  ;;  %v300_v11 = vld [vmem:[%s1596_s25 + $0x6d8] sm:$0xff] }
  0x36   : > { %293 = vst [vmem:[%s1604_s26 + $0x238] sm:$0xff] %v292_v7  ;;  %295 = vst [vmem:[%s1604_s26 + $0x240] sm:$0xff] %v294_v8  ;;  %v302_v12 = vld [vmem:[%s1596_s25 + $0x720] sm:$0xff]  ;;  %v304_v13 = vld [vmem:[%s1596_s25 + $0x728] sm:$0xff] }
  0x37   : > { %297 = vst [vmem:[%s1604_s26 + $0x248] sm:$0xff] %v296_v9  ;;  %299 = vst [vmem:[%s1604_s26 + $0x250] sm:$0xff] %v298_v10  ;;  %v306_v14 = vld [vmem:[%s1596_s25 + $0x730] sm:$0xff]  ;;  %v308_v15 = vld [vmem:[%s1596_s25 + $0x738] sm:$0xff] }
  0x38   : > { %301 = vst [vmem:[%s1604_s26 + $0x258] sm:$0xff] %v300_v11  ;;  %303 = vst [vmem:[%s1604_s26 + $0x260] sm:$0xff] %v302_v12  ;;  %v310_v16 = vld [vmem:[%s1596_s25 + $0x780] sm:$0xff]  ;;  %v312_v17 = vld [vmem:[%s1596_s25 + $0x788] sm:$0xff] }
  0x39   : > { %305 = vst [vmem:[%s1604_s26 + $0x268] sm:$0xff] %v304_v13  ;;  %307 = vst [vmem:[%s1604_s26 + $0x270] sm:$0xff] %v306_v14  ;;  %v314_v18 = vld [vmem:[%s1596_s25 + $0x790] sm:$0xff]  ;;  %v316_v19 = vld [vmem:[%s1596_s25 + $0x798] sm:$0xff] }
  0x3a   : > { %309 = vst [vmem:[%s1604_s26 + $0x278] sm:$0xff] %v308_v15  ;;  %311 = vst [vmem:[%s1604_s26 + $0x280] sm:$0xff] %v310_v16  ;;  %v318_v20 = vld [vmem:[%s1596_s25 + $0x7e0] sm:$0xff]  ;;  %v320_v21 = vld [vmem:[%s1596_s25 + $0x7e8] sm:$0xff] }
  0x3b   : > { %313 = vst [vmem:[%s1604_s26 + $0x288] sm:$0xff] %v312_v17  ;;  %315 = vst [vmem:[%s1604_s26 + $0x290] sm:$0xff] %v314_v18  ;;  %v322_v22 = vld [vmem:[%s1596_s25 + $0x7f0] sm:$0xff]  ;;  %v324_v23 = vld [vmem:[%s1596_s25 + $0x7f8] sm:$0xff] }
  0x3c   : > { %317 = vst [vmem:[%s1604_s26 + $0x298] sm:$0xff] %v316_v19  ;;  %319 = vst [vmem:[%s1604_s26 + $0x2a0] sm:$0xff] %v318_v20  ;;  %v326_v24 = vld [vmem:[%s1596_s25 + $0x840] sm:$0xff]  ;;  %v328_v25 = vld [vmem:[%s1596_s25 + $0x848] sm:$0xff] }
  0x3d   : > { %321 = vst [vmem:[%s1604_s26 + $0x2a8] sm:$0xff] %v320_v21  ;;  %323 = vst [vmem:[%s1604_s26 + $0x2b0] sm:$0xff] %v322_v22  ;;  %v330_v26 = vld [vmem:[%s1596_s25 + $0x850] sm:$0xff]  ;;  %v332_v27 = vld [vmem:[%s1596_s25 + $0x858] sm:$0xff] }
  0x3e   : > { %325 = vst [vmem:[%s1604_s26 + $0x2b8] sm:$0xff] %v324_v23  ;;  %327 = vst [vmem:[%s1604_s26 + $0x2c0] sm:$0xff] %v326_v24  ;;  %v334_v28 = vld [vmem:[%s1596_s25 + $0x8a0] sm:$0xff]  ;;  %v336_v29 = vld [vmem:[%s1596_s25 + $0x8a8] sm:$0xff] }
  0x3f   : > { %329 = vst [vmem:[%s1604_s26 + $0x2c8] sm:$0xff] %v328_v25  ;;  %331 = vst [vmem:[%s1604_s26 + $0x2d0] sm:$0xff] %v330_v26  ;;  %v338_v30 = vld [vmem:[%s1596_s25 + $0x8b0] sm:$0xff]  ;;  %v340_v31 = vld [vmem:[%s1596_s25 + $0x8b8] sm:$0xff] }
  0x40   : > { %333 = vst [vmem:[%s1604_s26 + $0x2d8] sm:$0xff] %v332_v27  ;;  %335 = vst [vmem:[%s1604_s26 + $0x2e0] sm:$0xff] %v334_v28  ;;  %v342_v32 = vld [vmem:[%s1596_s25 + $0x900] sm:$0xff]  ;;  %v344_v33 = vld [vmem:[%s1596_s25 + $0x908] sm:$0xff] }
  0x41   : > { %337 = vst [vmem:[%s1604_s26 + $0x2e8] sm:$0xff] %v336_v29  ;;  %339 = vst [vmem:[%s1604_s26 + $0x2f0] sm:$0xff] %v338_v30  ;;  %v346_v34 = vld [vmem:[%s1596_s25 + $0x910] sm:$0xff]  ;;  %v348_v35 = vld [vmem:[%s1596_s25 + $0x918] sm:$0xff] }
  0x42   : > { %341 = vst [vmem:[%s1604_s26 + $0x2f8] sm:$0xff] %v340_v31  ;;  %343 = vst [vmem:[%s1604_s26 + $0x300] sm:$0xff] %v342_v32  ;;  %v350_v36 = vld [vmem:[%s1596_s25 + $0x960] sm:$0xff]  ;;  %v352_v37 = vld [vmem:[%s1596_s25 + $0x968] sm:$0xff] }
  0x43   : > { %345 = vst [vmem:[%s1604_s26 + $0x308] sm:$0xff] %v344_v33  ;;  %347 = vst [vmem:[%s1604_s26 + $0x310] sm:$0xff] %v346_v34  ;;  %v354_v38 = vld [vmem:[%s1596_s25 + $0x970] sm:$0xff]  ;;  %v356_v39 = vld [vmem:[%s1596_s25 + $0x978] sm:$0xff] }
  0x44   : > { %349 = vst [vmem:[%s1604_s26 + $0x318] sm:$0xff] %v348_v35  ;;  %351 = vst [vmem:[%s1604_s26 + $0x320] sm:$0xff] %v350_v36  ;;  %v358_v40 = vld [vmem:[%s1596_s25 + $0x9c0] sm:$0xff]  ;;  %v360_v41 = vld [vmem:[%s1596_s25 + $0x9c8] sm:$0xff] }
  0x45   : > { %353 = vst [vmem:[%s1604_s26 + $0x328] sm:$0xff] %v352_v37  ;;  %355 = vst [vmem:[%s1604_s26 + $0x330] sm:$0xff] %v354_v38  ;;  %v362_v42 = vld [vmem:[%s1596_s25 + $0x9d0] sm:$0xff]  ;;  %v364_v43 = vld [vmem:[%s1596_s25 + $0x9d8] sm:$0xff] }
  0x46   : > { %357 = vst [vmem:[%s1604_s26 + $0x338] sm:$0xff] %v356_v39  ;;  %359 = vst [vmem:[%s1604_s26 + $0x340] sm:$0xff] %v358_v40 }
  0x47   : > { %361 = vst [vmem:[%s1604_s26 + $0x348] sm:$0xff] %v360_v41  ;;  %363 = vst [vmem:[%s1604_s26 + $0x350] sm:$0xff] %v362_v42 }
  0x48   : > { %365 = vst [vmem:[%s1604_s26 + $0x358] sm:$0xff] %v364_v43 }
  0x49 PF: > { %p1354_p5 = scmp.ge.s32.totalorder %s1539_s14, 1  ;;  %p370_p6 = scmp.lt.s32.totalorder %s1539_s14, 4 }
  0x4b   : > { %p371_p7 = pnand %p1354_p5, %p370_p6 }
  0x4c   : > { %s377_s27 = sand.u32 (!%p371_p7), 1, %s1531_s12   ;;  %v1822_v44 = vld.sshfl [vmem:[%s1977_s1] sm:$0x33 pattern:$0x76325410] (!%p371_p7)  ;;  %vm1073_vm0 = vcmask (!%p371_p7), 719872  }
  0x4d   : > { %374 = sbr.rel (%p371_p7) target bundleno = 415 (0x19f), region = 51  ;;  %v1826_v45 = vcombine.high (!%p371_p7), %v1822_v44, %v1822_v44  ;;  %v517_v46 = vld [vmem:[%s1978_s2] sm:$0xf] (!%p371_p7)  ;;  %v1541_v47 = vmov (!%p371_p7), 0   ;;  %vm1077_vm1 = vcmask (!%p371_p7), 1043456   ;;  %s1355_s7 = sshll.u32 (!%p371_p7), %s1348_s15, 3 }
  0x4e   : > { %s1482_s30 = smul.u32 (!%p371_p7), 864, %s377_s27  ;;  %1508 = vset.pattern.permute.xlu0 (!%p371_p7), %v1541_v47  ;;  %p402_p8 = scmp.lt.s32.totalorder (!%p371_p7), %s1355_s7, 23 }
  0x4f   : > { %1471 = vmatprep.mubr.msk.bf16.mxu0 (!%p371_p7), %vm1073_vm0, %v1826_v45  ;;  %1473 = vmatprep.mubr.msk.bf16.mxu1 (!%p371_p7), %vm1073_vm0, %v1826_v45 }
  0x50   : > { %s1835_s6 = scalar_lea.vmem (!%p371_p7), [#allocation2], %s1482_s30  ;;  %520 = vperm.xlu0 (!%p371_p7), %1508, %v517_v46  }
  0x51   : > { %v409_v48 = vld [vmem:[%s1835_s6] sm:$0xff] (!%p371_p7)  ;;  %v410_v50 = vld [vmem:[%s1835_s6 + $0x8] sm:$0xff] (!%p371_p7) }
  0x52   : > { %v413_v49 = vld [vmem:[%s1835_s6 + $0x20] sm:$0xff] (!%p371_p7)  ;;  %v414_v52 = vld [vmem:[%s1835_s6 + $0x28] sm:$0xff] (!%p371_p7) }
  0x53   : > { %v1359_v51 = vcombine.high (!%p371_p7), %v409_v48, %v413_v49  ;;  %v1358_v53 = vcombine.low (!%p371_p7), %v409_v48, %v413_v49  ;;  %v417_v54 = vld [vmem:[%s1835_s6 + $0x40] sm:$0xff] (!%p371_p7)  ;;  %v1361_v56 = vcombine.high (!%p371_p7), %v410_v50, %v414_v52  ;;  %v1360_v57 = vcombine.low (!%p371_p7), %v410_v50, %v414_v52  ;;  %v418_v59 = vld [vmem:[%s1835_s6 + $0x48] sm:$0xff] (!%p371_p7) }
  0x54   : > { %v421_v55 = vld [vmem:[%s1835_s6 + $0x60] sm:$0xff]  ;;  %v422_v60 = vld [vmem:[%s1835_s6 + $0x68] sm:$0xff]  ;;  %s1984_s7 = smov (!%p402_p8, %s1355_s7), 23 }
  0x55   : > { %v1367_v58 = vcombine.high %v417_v54, %v421_v55  ;;  %v425_v61 = vld [vmem:[%s1835_s6 + $0x80] sm:$0xff]  ;;  %1102 = vmatprep.subr.bf16.mxu0 %v1359_v51  ;;  %v1369_v62 = vcombine.high %v418_v59, %v422_v60  ;;  %v426_v0 = vld [vmem:[%s1835_s6 + $0x88] sm:$0xff]  ;;  %1143 = vmatprep.subr.bf16.mxu1 %v1361_v56  ;;  %v1366_v2 = vcombine.low %v417_v54, %v421_v55  ;;  %s1356_s8 = sshll.u32 %s1984_s7, 2 }
  0x56   : > { %v429_v63 = vld [vmem:[%s1835_s6 + $0xa0] sm:$0xff]  ;;  %v430_v1 = vld [vmem:[%s1835_s6 + $0xa8] sm:$0xff]  ;;  %1103 = vmatpush1.bf16.msra.mxu0 %v1358_v53  ;;  %1144 = vmatpush1.bf16.msra.mxu1 %v1360_v57  ;;  %v1368_v3 = vcombine.low %v418_v59, %v422_v60  ;;  %s405_s11 = scalar_lea.vmem %s1979_s3, %s1356_s8 }
  0x57   : > { %1104 = vmatprep.subr.bf16.mxu0 %v1367_v58  ;;  %v1375_v4 = vcombine.high %v425_v61, %v429_v63  ;;  %1145 = vmatprep.subr.bf16.mxu1 %v1369_v62  ;;  %v1377_v5 = vcombine.high %v426_v0, %v430_v1  ;;  %v433_v6 = vld [vmem:[%s1835_s6 + $0xc0] sm:$0xff]  ;;  %v434_v8 = vld [vmem:[%s1835_s6 + $0xc8] sm:$0xff]  ;;  %v1374_v10 = vcombine.low %v425_v61, %v429_v63 }
  0x58   : > { %v437_v7 = vld [vmem:[%s1835_s6 + $0xe0] sm:$0xff]  ;;  %v438_v9 = vld [vmem:[%s1835_s6 + $0xe8] sm:$0xff]  ;;  %v1376_v11 = vcombine.low %v426_v0, %v430_v1 }
  0x59   : > { %v1383_v12 = vcombine.high %v433_v6, %v437_v7  ;;  %v1385_v13 = vcombine.high %v434_v8, %v438_v9  ;;  %v441_v14 = vld [vmem:[%s1835_s6 + $0x100] sm:$0xff]  ;;  %v442_v16 = vld [vmem:[%s1835_s6 + $0x108] sm:$0xff]  ;;  %v1382_v18 = vcombine.low %v433_v6, %v437_v7  ;;  %v1384_v19 = vcombine.low %v434_v8, %v438_v9 }
  0x5a   : > { %1105 = vmatpush1.bf16.msra.mxu0 %v1366_v2  ;;  %1146 = vmatpush1.bf16.msra.mxu1 %v1368_v3  ;;  %v445_v15 = vld [vmem:[%s1835_s6 + $0x120] sm:$0xff]  ;;  %v446_v17 = vld [vmem:[%s1835_s6 + $0x128] sm:$0xff] }
  0x5b   : > { %1106 = vmatprep.subr.bf16.mxu0 %v1375_v4  ;;  %1147 = vmatprep.subr.bf16.mxu1 %v1377_v5  ;;  %v1391_v20 = vcombine.high %v441_v14, %v445_v15  ;;  %v1393_v21 = vcombine.high %v442_v16, %v446_v17  ;;  %v449_v22 = vld [vmem:[%s1835_s6 + $0x140] sm:$0xff]  ;;  %v450_v24 = vld [vmem:[%s1835_s6 + $0x148] sm:$0xff]  ;;  %v1390_v26 = vcombine.low %v441_v14, %v445_v15 }
  0x5c   : > { %v453_v23 = vld [vmem:[%s1835_s6 + $0x160] sm:$0xff]  ;;  %v454_v25 = vld [vmem:[%s1835_s6 + $0x168] sm:$0xff]  ;;  %v1392_v27 = vcombine.low %v442_v16, %v446_v17 }
  0x5d   : > { %v1399_v28 = vcombine.high %v449_v22, %v453_v23  ;;  %v1401_v29 = vcombine.high %v450_v24, %v454_v25  ;;  %v457_v30 = vld [vmem:[%s1835_s6 + $0x180] sm:$0xff]  ;;  %v458_v32 = vld [vmem:[%s1835_s6 + $0x188] sm:$0xff]  ;;  %v1398_v34 = vcombine.low %v449_v22, %v453_v23  ;;  %v1400_v35 = vcombine.low %v450_v24, %v454_v25 }
  0x5e   : > { %1107 = vmatpush1.bf16.msra.mxu0 %v1374_v10  ;;  %1148 = vmatpush1.bf16.msra.mxu1 %v1376_v11  ;;  %v461_v31 = vld [vmem:[%s1835_s6 + $0x1a0] sm:$0xff]  ;;  %v462_v33 = vld [vmem:[%s1835_s6 + $0x1a8] sm:$0xff] }
  0x5f   : > { %1108 = vmatprep.subr.bf16.mxu0 %v1383_v12  ;;  %1149 = vmatprep.subr.bf16.mxu1 %v1385_v13  ;;  %v1407_v36 = vcombine.high %v457_v30, %v461_v31  ;;  %v1409_v37 = vcombine.high %v458_v32, %v462_v33  ;;  %v465_v38 = vld [vmem:[%s1835_s6 + $0x1c0] sm:$0xff]  ;;  %v466_v40 = vld [vmem:[%s1835_s6 + $0x1c8] sm:$0xff]  ;;  %v1406_v42 = vcombine.low %v457_v30, %v461_v31 }
  0x60   : > { %v469_v39 = vld [vmem:[%s1835_s6 + $0x1e0] sm:$0xff]  ;;  %v470_v41 = vld [vmem:[%s1835_s6 + $0x1e8] sm:$0xff]  ;;  %v1408_v43 = vcombine.low %v458_v32, %v462_v33  ;;  %v411_v32 = vld [vmem:[%s1835_s6 + $0x10] sm:$0xff] }
  0x61   : > { %v1415_v46 = vcombine.high %v465_v38, %v469_v39  ;;  %v1417_v47 = vcombine.high %v466_v40, %v470_v41  ;;  %v473_v48 = vld [vmem:[%s1835_s6 + $0x200] sm:$0xff]  ;;  %v474_v50 = vld [vmem:[%s1835_s6 + $0x208] sm:$0xff]  ;;  %v1414_v52 = vcombine.low %v465_v38, %v469_v39  ;;  %v1416_v53 = vcombine.low %v466_v40, %v470_v41  ;;  %v415_v33 = vld [vmem:[%s1835_s6 + $0x30] sm:$0xff] }
  0x62   : > { %1109 = vmatpush1.bf16.msra.mxu0 %v1382_v18  ;;  %1150 = vmatpush1.bf16.msra.mxu1 %v1384_v19  ;;  %v477_v49 = vld [vmem:[%s1835_s6 + $0x220] sm:$0xff]  ;;  %v478_v51 = vld [vmem:[%s1835_s6 + $0x228] sm:$0xff]  ;;  %v419_v40 = vld [vmem:[%s1835_s6 + $0x50] sm:$0xff] }
  0x63   : > { %1110 = vmatprep.subr.bf16.mxu0 %v1391_v20  ;;  %1151 = vmatprep.subr.bf16.mxu1 %v1393_v21  ;;  %v1423_v54 = vcombine.high %v473_v48, %v477_v49  ;;  %v1425_v55 = vcombine.high %v474_v50, %v478_v51  ;;  %v481_v56 = vld [vmem:[%s1835_s6 + $0x240] sm:$0xff]  ;;  %v482_v58 = vld [vmem:[%s1835_s6 + $0x248] sm:$0xff]  ;;  %v1422_v60 = vcombine.low %v473_v48, %v477_v49  ;;  %v423_v41 = vld [vmem:[%s1835_s6 + $0x70] sm:$0xff] }
  0x64   : > { %v485_v57 = vld [vmem:[%s1835_s6 + $0x260] sm:$0xff]  ;;  %v486_v59 = vld [vmem:[%s1835_s6 + $0x268] sm:$0xff]  ;;  %v1424_v61 = vcombine.low %v474_v50, %v478_v51  ;;  %v1371_v48 = vcombine.high %v419_v40, %v423_v41  ;;  %v427_v50 = vld [vmem:[%s1835_s6 + $0x90] sm:$0xff] }
  0x65   : > { %v1431_v62 = vcombine.high %v481_v56, %v485_v57  ;;  %v1433_v63 = vcombine.high %v482_v58, %v486_v59  ;;  %v489_v0 = vld [vmem:[%s1835_s6 + $0x280] sm:$0xff]  ;;  %v490_v2 = vld [vmem:[%s1835_s6 + $0x288] sm:$0xff]  ;;  %v1430_v4 = vcombine.low %v481_v56, %v485_v57  ;;  %v1432_v5 = vcombine.low %v482_v58, %v486_v59  ;;  %v431_v51 = vld [vmem:[%s1835_s6 + $0xb0] sm:$0xff] }
  0x66   : > { %1111 = vmatpush1.bf16.msra.mxu0 %v1390_v26  ;;  %1152 = vmatpush1.bf16.msra.mxu1 %v1392_v27  ;;  %v493_v1 = vld [vmem:[%s1835_s6 + $0x2a0] sm:$0xff]  ;;  %v494_v3 = vld [vmem:[%s1835_s6 + $0x2a8] sm:$0xff]  ;;  %v1379_v56 = vcombine.high %v427_v50, %v431_v51  ;;  %v435_v58 = vld [vmem:[%s1835_s6 + $0xd0] sm:$0xff] }
  0x67   : > { %1112 = vmatprep.subr.bf16.mxu0 %v1399_v28  ;;  %1153 = vmatprep.subr.bf16.mxu1 %v1401_v29  ;;  %v1439_v6 = vcombine.high %v489_v0, %v493_v1  ;;  %v1441_v7 = vcombine.high %v490_v2, %v494_v3  ;;  %v497_v8 = vld [vmem:[%s1835_s6 + $0x2c0] sm:$0xff]  ;;  %v498_v10 = vld [vmem:[%s1835_s6 + $0x2c8] sm:$0xff]  ;;  %v1438_v12 = vcombine.low %v489_v0, %v493_v1  ;;  %v439_v59 = vld [vmem:[%s1835_s6 + $0xf0] sm:$0xff] }
  0x68   : > { %v501_v9 = vld [vmem:[%s1835_s6 + $0x2e0] sm:$0xff]  ;;  %v502_v11 = vld [vmem:[%s1835_s6 + $0x2e8] sm:$0xff]  ;;  %v1440_v13 = vcombine.low %v490_v2, %v494_v3  ;;  %v1387_v0 = vcombine.high %v435_v58, %v439_v59  ;;  %v443_v2 = vld [vmem:[%s1835_s6 + $0x110] sm:$0xff] }
  0x69   : > { %v1447_v14 = vcombine.high %v497_v8, %v501_v9  ;;  %v1449_v15 = vcombine.high %v498_v10, %v502_v11  ;;  %v505_v16 = vld [vmem:[%s1835_s6 + $0x300] sm:$0xff]  ;;  %v506_v18 = vld [vmem:[%s1835_s6 + $0x308] sm:$0xff]  ;;  %v1446_v20 = vcombine.low %v497_v8, %v501_v9  ;;  %v1448_v21 = vcombine.low %v498_v10, %v502_v11  ;;  %v447_v3 = vld [vmem:[%s1835_s6 + $0x130] sm:$0xff] }
  0x6a   : > { %1113 = vmatpush1.bf16.msra.mxu0 %v1398_v34  ;;  %1154 = vmatpush1.bf16.msra.mxu1 %v1400_v35  ;;  %v509_v17 = vld [vmem:[%s1835_s6 + $0x320] sm:$0xff]  ;;  %v510_v19 = vld [vmem:[%s1835_s6 + $0x328] sm:$0xff]  ;;  %v412_v34 = vld [vmem:[%s1835_s6 + $0x18] sm:$0xff] }
  0x6b   : > { %1114 = vmatprep.subr.bf16.mxu0 %v1407_v36  ;;  %1155 = vmatprep.subr.bf16.mxu1 %v1409_v37  ;;  %v1455_v22 = vcombine.high %v505_v16, %v509_v17  ;;  %v1457_v23 = vcombine.high %v506_v18, %v510_v19  ;;  %v513_v24 = vld [vmem:[%s1835_s6 + $0x340] sm:$0xff]  ;;  %v514_v25 = vld [vmem:[%s1835_s6 + $0x348] sm:$0xff]  ;;  %v1454_v26 = vcombine.low %v505_v16, %v509_v17  ;;  %v416_v35 = vld [vmem:[%s1835_s6 + $0x38] sm:$0xff] }
  0x6c   : > { %v1456_v27 = vcombine.low %v506_v18, %v510_v19  ;;  %v1463_v28 = vcombine.high %v513_v24, %v513_v24  ;;  %v1462_v29 = vcombine.low %v513_v24, %v513_v24  ;;  %v1465_v30 = vcombine.high %v514_v25, %v514_v25  ;;  %v451_v9 = vld [vmem:[%s1835_s6 + $0x150] sm:$0xff]  ;;  %v452_v11 = vld [vmem:[%s1835_s6 + $0x158] sm:$0xff] }
  0x6d   : > { %v1464_v31 = vcombine.low %v514_v25, %v514_v25  ;;  %v1363_v37 = vcombine.high %v411_v32, %v415_v33  ;;  %v1365_v39 = vcombine.high %v412_v34, %v416_v35  ;;  %v455_v10 = vld [vmem:[%s1835_s6 + $0x170] sm:$0xff]  ;;  %v460_v19 = vld [vmem:[%s1835_s6 + $0x198] sm:$0xff] }
  0x6e   : > { %1115 = vmatpush1.bf16.msra.mxu0 %v1406_v42  ;;  %1156 = vmatpush1.bf16.msra.mxu1 %v1408_v43  ;;  %v1079_v36 = vsel %vm1077_vm1, %v1462_v29, 0  ;;  %v420_v42 = vld [vmem:[%s1835_s6 + $0x58] sm:$0xff]  ;;  %v459_v17 = vld [vmem:[%s1835_s6 + $0x190] sm:$0xff] }
  0x6f   : > { %1116 = vmatprep.subr.bf16.mxu0 %v1415_v46  ;;  %1157 = vmatprep.subr.bf16.mxu1 %v1417_v47  ;;  %v1085_v38 = vsel %vm1077_vm1, %v1464_v31, 0  ;;  %v424_v43 = vld [vmem:[%s1835_s6 + $0x78] sm:$0xff]  ;;  %v1362_v46 = vcombine.low %v411_v32, %v415_v33  ;;  %v1364_v47 = vcombine.low %v412_v34, %v416_v35  ;;  %v463_v18 = vld [vmem:[%s1835_s6 + $0x1b0] sm:$0xff] }
  0x70   : > { %v1373_v49 = vcombine.high %v420_v42, %v424_v43  ;;  %v467_v25 = vld [vmem:[%s1835_s6 + $0x1d0] sm:$0xff]  ;;  %v1410_v29 = vcombine.low %v459_v17, %v463_v18  ;;  %v476_v35 = vld [vmem:[%s1835_s6 + $0x218] sm:$0xff] }
  0x71   : > { %v475_v33 = vld [vmem:[%s1835_s6 + $0x210] sm:$0xff] }
  0x72   : > { %1117 = vmatpush1.bf16.msra.mxu0 %v1414_v52  ;;  %1158 = vmatpush1.bf16.msra.mxu1 %v1416_v53  ;;  %v428_v52 = vld [vmem:[%s1835_s6 + $0x98] sm:$0xff]  ;;  %v479_v34 = vld [vmem:[%s1835_s6 + $0x230] sm:$0xff] }
  0x73   : > { %1118 = vmatprep.subr.bf16.mxu0 %v1423_v54  ;;  %1159 = vmatprep.subr.bf16.mxu1 %v1425_v55  ;;  %v432_v53 = vld [vmem:[%s1835_s6 + $0xb8] sm:$0xff]  ;;  %v1370_v54 = vcombine.low %v419_v40, %v423_v41  ;;  %v1372_v55 = vcombine.low %v420_v42, %v424_v43  ;;  %v483_v41 = vld [vmem:[%s1835_s6 + $0x250] sm:$0xff] }
  0x74   : > { %v1381_v57 = vcombine.high %v428_v52, %v432_v53  ;;  %v487_v42 = vld [vmem:[%s1835_s6 + $0x270] sm:$0xff]  ;;  %v484_v43 = vld [vmem:[%s1835_s6 + $0x258] sm:$0xff] }
  0x76   : > { %1119 = vmatpush1.bf16.msra.mxu0 %v1422_v60  ;;  %1160 = vmatpush1.bf16.msra.mxu1 %v1424_v61  ;;  %v436_v60 = vld [vmem:[%s1835_s6 + $0xd8] sm:$0xff] }
  0x77   : > { %1120 = vmatprep.subr.bf16.mxu0 %v1431_v62  ;;  %1161 = vmatprep.subr.bf16.mxu1 %v1433_v63  ;;  %v440_v61 = vld [vmem:[%s1835_s6 + $0xf8] sm:$0xff]  ;;  %v1378_v62 = vcombine.low %v427_v50, %v431_v51  ;;  %v1380_v63 = vcombine.low %v428_v52, %v432_v53  ;;  %v491_v51 = vld [vmem:[%s1835_s6 + $0x290] sm:$0xff] }
  0x78   : > { %v1389_v1 = vcombine.high %v436_v60, %v440_v61  ;;  %v495_v52 = vld [vmem:[%s1835_s6 + $0x2b0] sm:$0xff]  ;;  %v492_v53 = vld [vmem:[%s1835_s6 + $0x298] sm:$0xff] }
  0x7a   : > { %1121 = vmatpush1.bf16.msra.mxu0 %v1430_v4  ;;  %1162 = vmatpush1.bf16.msra.mxu1 %v1432_v5  ;;  %v444_v4 = vld [vmem:[%s1835_s6 + $0x118] sm:$0xff] }
  0x7b   : > { %1122 = vmatprep.subr.bf16.mxu0 %v1439_v6  ;;  %1163 = vmatprep.subr.bf16.mxu1 %v1441_v7  ;;  %v448_v5 = vld [vmem:[%s1835_s6 + $0x138] sm:$0xff]  ;;  %v1386_v6 = vcombine.low %v435_v58, %v439_v59  ;;  %v1395_v7 = vcombine.high %v443_v2, %v447_v3  ;;  %v499_v59 = vld [vmem:[%s1835_s6 + $0x2d0] sm:$0xff] }
  0x7c   : > { %v1397_v8 = vcombine.high %v444_v4, %v448_v5 }
  0x7e   : > { %1123 = vmatpush1.bf16.msra.mxu0 %v1438_v12  ;;  %1164 = vmatpush1.bf16.msra.mxu1 %v1440_v13  ;;  %v456_v12 = vld [vmem:[%s1835_s6 + $0x178] sm:$0xff]  ;;  %v1394_v13 = vcombine.low %v443_v2, %v447_v3  ;;  %v507_v3 = vld [vmem:[%s1835_s6 + $0x310] sm:$0xff] }
  0x7f   : > { %1124 = vmatprep.subr.bf16.mxu0 %v1447_v14  ;;  %1165 = vmatprep.subr.bf16.mxu1 %v1449_v15  ;;  %v1396_v14 = vcombine.low %v444_v4, %v448_v5  ;;  %v1403_v15 = vcombine.high %v451_v9, %v455_v10  ;;  %v1405_v16 = vcombine.high %v452_v11, %v456_v12  ;;  %v511_v4 = vld [vmem:[%s1835_s6 + $0x330] sm:$0xff]  ;;  %v508_v5 = vld [vmem:[%s1835_s6 + $0x318] sm:$0xff] }
  0x82   : > { %1125 = vmatpush1.bf16.msra.mxu0 %v1446_v20  ;;  %1166 = vmatpush1.bf16.msra.mxu1 %v1448_v21  ;;  %v464_v20 = vld [vmem:[%s1835_s6 + $0x1b8] sm:$0xff]  ;;  %v1402_v21 = vcombine.low %v451_v9, %v455_v10  ;;  %v515_v10 = vld [vmem:[%s1835_s6 + $0x350] sm:$0xff] }
  0x83   : > { %1126 = vmatprep.subr.bf16.mxu0 %v1455_v22  ;;  %1167 = vmatprep.subr.bf16.mxu1 %v1457_v23  ;;  %v1404_v22 = vcombine.low %v452_v11, %v456_v12  ;;  %v1411_v23 = vcombine.high %v459_v17, %v463_v18  ;;  %v1413_v24 = vcombine.high %v460_v19, %v464_v20  ;;  %v516_v11 = vld [vmem:[%s1835_s6 + $0x358] sm:$0xff] }
  0x84   : > { %v1458_v12 = vcombine.low %v507_v3, %v511_v4  ;;  %v1468_v17 = vcombine.low %v516_v11, %v516_v11 }
  0x86   : > { %1127 = vmatpush1.bf16.msra.mxu0 %v1454_v26  ;;  %1168 = vmatpush1.bf16.msra.mxu1 %v1456_v27  ;;  %v471_v26 = vld [vmem:[%s1835_s6 + $0x1f0] sm:$0xff]  ;;  %v468_v27 = vld [vmem:[%s1835_s6 + $0x1d8] sm:$0xff] }
  0x87   : > { %1470 = vmatprep.subr.msk.bf16.mxu0 %vm1077_vm1, %v1463_v28  ;;  %1472 = vmatprep.subr.msk.bf16.mxu1 %vm1077_vm1, %v1465_v30  ;;  %v472_v28 = vld [vmem:[%s1835_s6 + $0x1f8] sm:$0xff]  ;;  %v1412_v30 = vcombine.low %v460_v19, %v464_v20  ;;  %v1419_v31 = vcombine.high %v467_v25, %v471_v26  ;;  %v1097_v19 = vsel %vm1077_vm1, %v1468_v17, 0 }
  0x88   : > { %v1421_v32 = vcombine.high %v468_v27, %v472_v28 }
  0x8a   : > { %1129 = vmatpush1.bf16.msra.mxu0 %v1079_v36  ;;  %1170 = vmatpush1.bf16.msra.mxu1 %v1085_v38  ;;  %v480_v36 = vld [vmem:[%s1835_s6 + $0x238] sm:$0xff]  ;;  %v1420_v38 = vcombine.low %v468_v27, %v472_v28 }
  0x8b   : > { %1184 = vmatprep.subr.bf16.mxu0 %v1363_v37  ;;  %1225 = vmatprep.subr.bf16.mxu1 %v1365_v39  ;;  %v1418_v37 = vcombine.low %v467_v25, %v471_v26  ;;  %v1427_v39 = vcombine.high %v475_v33, %v479_v34  ;;  %v1429_v40 = vcombine.high %v476_v35, %v480_v36 }
  0x8d   : > { %1135 = vmatmul.mubr.bf16.vlgmr.msra.gmra.mrb[0].mxu0 %v1822_v44  ;;  %1176 = vmatmul.mubr.bf16.vlgmr.msra.gmra.mrb[0].mxu1 %v1822_v44 }
  0x8e   : > { %1185 = vmatpush1.bf16.msra.mxu0 %v1362_v46  ;;  %1226 = vmatpush1.bf16.msra.mxu1 %v1364_v47  ;;  %v488_v46 = vld [vmem:[%s1835_s6 + $0x278] sm:$0xff]  ;;  %v1426_v47 = vcombine.low %v475_v33, %v479_v34 }
  0x8f   : > { %1186 = vmatprep.subr.bf16.mxu0 %v1371_v48  ;;  %1227 = vmatprep.subr.bf16.mxu1 %v1373_v49  ;;  %v1428_v48 = vcombine.low %v476_v35, %v480_v36  ;;  %v1435_v49 = vcombine.high %v483_v41, %v487_v42  ;;  %v1437_v50 = vcombine.high %v484_v43, %v488_v46 }
  0x90   : > { %1475 = vmatprep.mubr.msk.bf16.mxu0 %vm1073_vm0, %v1826_v45  ;;  %1477 = vmatprep.mubr.msk.bf16.mxu1 %vm1073_vm0, %v1826_v45  ;;  %v1388_v45 = vcombine.low %v436_v60, %v440_v61  ;;  %v503_v60 = vld [vmem:[%s1835_s6 + $0x2f0] sm:$0xff]  ;;  %v500_v61 = vld [vmem:[%s1835_s6 + $0x2d8] sm:$0xff] }
  0x92   : > { %1187 = vmatpush1.bf16.msra.mxu0 %v1370_v54  ;;  %1228 = vmatpush1.bf16.msra.mxu1 %v1372_v55  ;;  %v496_v54 = vld [vmem:[%s1835_s6 + $0x2b8] sm:$0xff]  ;;  %v1434_v55 = vcombine.low %v483_v41, %v487_v42 }
  0x93   : > { %1188 = vmatprep.subr.bf16.mxu0 %v1379_v56  ;;  %1229 = vmatprep.subr.bf16.mxu1 %v1381_v57  ;;  %v1436_v56 = vcombine.low %v484_v43, %v488_v46  ;;  %v1443_v57 = vcombine.high %v491_v51, %v495_v52  ;;  %v1445_v58 = vcombine.high %v492_v53, %v496_v54 }
  0x96   : > { %1189 = vmatpush1.bf16.msra.mxu0 %v1378_v62  ;;  %1230 = vmatpush1.bf16.msra.mxu1 %v1380_v63  ;;  %v504_v62 = vld [vmem:[%s1835_s6 + $0x2f8] sm:$0xff]  ;;  %v1442_v63 = vcombine.low %v491_v51, %v495_v52 }
  0x97   : > { %1190 = vmatprep.subr.bf16.mxu0 %v1387_v0  ;;  %1231 = vmatprep.subr.bf16.mxu1 %v1389_v1  ;;  %v1444_v0 = vcombine.low %v492_v53, %v496_v54  ;;  %v1451_v1 = vcombine.high %v499_v59, %v503_v60  ;;  %v1453_v2 = vcombine.high %v500_v61, %v504_v62 }
  0x9a   : > { %1191 = vmatpush1.bf16.msra.mxu0 %v1386_v6  ;;  %1232 = vmatpush1.bf16.msra.mxu1 %v1388_v45  ;;  %v512_v6 = vld [vmem:[%s1835_s6 + $0x338] sm:$0xff]  ;;  %v1450_v45 = vcombine.low %v499_v59, %v503_v60 }
  0x9b   : > { %1192 = vmatprep.subr.bf16.mxu0 %v1395_v7  ;;  %1233 = vmatprep.subr.bf16.mxu1 %v1397_v8  ;;  %v1452_v7 = vcombine.low %v500_v61, %v504_v62  ;;  %v1459_v8 = vcombine.high %v507_v3, %v511_v4  ;;  %v1461_v9 = vcombine.high %v508_v5, %v512_v6 }
  0x9e   : > { %1193 = vmatpush1.bf16.msra.mxu0 %v1394_v13  ;;  %1234 = vmatpush1.bf16.msra.mxu1 %v1396_v14  ;;  %v1460_v13 = vcombine.low %v508_v5, %v512_v6  ;;  %v1467_v14 = vcombine.high %v515_v10, %v515_v10 }
  0x9f   : > { %1194 = vmatprep.subr.bf16.mxu0 %v1403_v15  ;;  %1235 = vmatprep.subr.bf16.mxu1 %v1405_v16  ;;  %v1466_v15 = vcombine.low %v515_v10, %v515_v10  ;;  %v1469_v16 = vcombine.high %v516_v11, %v516_v11 }
  0xa1   : > { %v1091_v18 = vsel %vm1077_vm1, %v1466_v15, 0 }
  0xa2   : > { %1195 = vmatpush1.bf16.msra.mxu0 %v1402_v21  ;;  %1236 = vmatpush1.bf16.msra.mxu1 %v1404_v22 }
  0xa3   : > { %1196 = vmatprep.subr.bf16.mxu0 %v1411_v23  ;;  %1237 = vmatprep.subr.bf16.mxu1 %v1413_v24 }
  0xa6   : > { %1197 = vmatpush1.bf16.msra.mxu0 %v1410_v29  ;;  %1238 = vmatpush1.bf16.msra.mxu1 %v1412_v30 }
  0xa7   : > { %1198 = vmatprep.subr.bf16.mxu0 %v1419_v31  ;;  %1239 = vmatprep.subr.bf16.mxu1 %v1421_v32 }
  0xaa   : > { %1199 = vmatpush1.bf16.msra.mxu0 %v1418_v37  ;;  %1240 = vmatpush1.bf16.msra.mxu1 %v1420_v38 }
  0xab   : > { %1200 = vmatprep.subr.bf16.mxu0 %v1427_v39  ;;  %1241 = vmatprep.subr.bf16.mxu1 %v1429_v40 }
  0xae   : > { %1201 = vmatpush1.bf16.msra.mxu0 %v1426_v47  ;;  %1242 = vmatpush1.bf16.msra.mxu1 %v1428_v48 }
  0xaf   : > { %1202 = vmatprep.subr.bf16.mxu0 %v1435_v49  ;;  %1243 = vmatprep.subr.bf16.mxu1 %v1437_v50 }
  0xb2   : > { %1203 = vmatpush1.bf16.msra.mxu0 %v1434_v55  ;;  %1244 = vmatpush1.bf16.msra.mxu1 %v1436_v56 }
  0xb3   : > { %1204 = vmatprep.subr.bf16.mxu0 %v1443_v57  ;;  %1245 = vmatprep.subr.bf16.mxu1 %v1445_v58 }
  0xb6   : > { %1205 = vmatpush1.bf16.msra.mxu0 %v1442_v63  ;;  %1246 = vmatpush1.bf16.msra.mxu1 %v1444_v0 }
  0xb7   : > { %1206 = vmatprep.subr.bf16.mxu0 %v1451_v1  ;;  %1247 = vmatprep.subr.bf16.mxu1 %v1453_v2 }
  0xba   : > { %1207 = vmatpush1.bf16.msra.mxu0 %v1450_v45  ;;  %1248 = vmatpush1.bf16.msra.mxu1 %v1452_v7 }
  0xbb   : > { %1208 = vmatprep.subr.bf16.mxu0 %v1459_v8  ;;  %1249 = vmatprep.subr.bf16.mxu1 %v1461_v9 }
  0xbe   : > { %1209 = vmatpush1.bf16.msra.mxu0 %v1458_v12  ;;  %1250 = vmatpush1.bf16.msra.mxu1 %v1460_v13 }
  0xbf   : > { %1474 = vmatprep.subr.msk.bf16.mxu0 %vm1077_vm1, %v1467_v14  ;;  %1476 = vmatprep.subr.msk.bf16.mxu1 %vm1077_vm1, %v1469_v16 }
  0xc2   : > { %1211 = vmatpush1.bf16.msra.mxu0 %v1091_v18  ;;  %1252 = vmatpush1.bf16.msra.mxu1 %v1097_v19 }
  0xc5   : > { %1217 = vmatmul.mubr.bf16.vlgmr.msra.gmra.mrb[4].mxu0 %v1822_v44  ;;  %1258 = vmatmul.mubr.bf16.vlgmr.msra.gmra.mrb[4].mxu1 %v1822_v44 }
  0xcf   : > { %v521_v20 = vpop.permute.xlu0 %520 }
 0x160   : > { %v1136_v21 = vpop.f32.mrb[0].mxu0  ;;  %v1177_v22 = vpop.f32.mrb[0].mxu1 }
 0x161   : > { %v1137_v23 = vadd.f32 %v1136_v21, %v521_v20  ;;  %v1138_v24 = vpop.f32.mrb[1].mxu0  ;;  %v1178_v26 = vadd.f32 %v1177_v22, %v521_v20  ;;  %v1179_v27 = vpop.f32.mrb[1].mxu1 }
 0x162   : > { %v1139_v25 = vadd.f32 %v1138_v24, %v521_v20  ;;  %v1140_v28 = vpop.f32.mrb[2].mxu0  ;;  %v1180_v29 = vadd.f32 %v1179_v27, %v521_v20  ;;  %v1181_v44 = vpop.f32.mrb[2].mxu1 }
 0x163   : > { %v1141_v30 = vpop.f32.mrb[3].mxu0  ;;  %v1182_v32 = vpop.f32.mrb[3].mxu1 }
 0x164   : > { %v1274_v31 = vcombine.low %v1137_v23, %v1139_v25  ;;  %v1275_v33 = vcombine.low %v1178_v26, %v1180_v29 }
 0x166   : > { %1282 = vst [vmem:[%s405_s11] sm:$0xff] %v1274_v31  ;;  %1283 = vst [vmem:[%s405_s11 + $0x8] sm:$0xff] %v1275_v33 }
 0x198   : > { %v1218_v34 = vpop.f32.mrb[4].mxu0  ;;  %v1259_v36 = vpop.f32.mrb[4].mxu1 }
 0x199   : > { %v1219_v35 = vadd.f32 %v1218_v34, %v521_v20  ;;  %v1220_v37 = vpop.f32.mrb[5].mxu0  ;;  %v1260_v38 = vadd.f32 %v1259_v36, %v521_v20  ;;  %v1261_v40 = vpop.f32.mrb[5].mxu1 }
 0x19a   : > { %v1221_v39 = vadd.f32 %v1220_v37, %v521_v20  ;;  %v1222_v41 = vpop.f32.mrb[6].mxu0  ;;  %v1262_v42 = vadd.f32 %v1261_v40, %v521_v20  ;;  %v1263_v43 = vpop.f32.mrb[6].mxu1 }
 0x19b   : > { %v1223_v46 = vpop.f32.mrb[7].mxu0  ;;  %v1264_v48 = vpop.f32.mrb[7].mxu1 }
 0x19c   : > { %v1276_v47 = vcombine.low %v1219_v35, %v1221_v39  ;;  %v1277_v49 = vcombine.low %v1260_v38, %v1262_v42 }
 0x19e   : > { %1284 = vst [vmem:[%s405_s11 + $0x10] sm:$0xff] %v1276_v47  ;;  %1285 = vst [vmem:[%s405_s11 + $0x18] sm:$0xff] %v1277_v49 }
 0x19f PF: > { %p10_p9 = scmp.ge.s32.totalorder %s1579_s16, 5   ;;  %s1980_s12 = smov %s1535_s13 }
 0x1a0   : > { %s1981_s13 = smov %s1588_s19  ;;  %s1982_s14 = smov %s1579_s16 }
 0x1a1   :  { %12 = sbr.rel (!%p10_p9) target bundleno = 2 (0x2), region = 90 }

</bundles_post_ra>
